<compile_context>
chip_gen: v6e
topology: v6e:2x2x1
jax: 0.10.0
libtpu: 0.0.40
codegen_flags: <defaults>
</compile_context>

<pallas_src>
import functools

import jax
import jax.numpy as jnp
from jax import lax
from jax.experimental import pallas as pl
from jax.experimental.pallas import tpu as pltpu


# ----------------------------------------------------------------------------
# Fused kernel: 3 x (conv1d k=3 pad=1 + ReLU) -> node-mean pooling (folded
# into the classifier weight) -> classifier, all in one grid step per batch
# tile.  Rows are ordered (batch, edge, t), channels last.
# ----------------------------------------------------------------------------
def _fused_kernel(x_ref, ws1_ref, ws2_ref, ws3_ref, wf_ref, bc_ref, out_ref,
                  *, T):
    """x_ref: (bt*E*T, Cin); ws*: (3*Cin+1, Cout); wf: (E*T, O, C);
    bc: (1, C); out: (bt, C)."""
    x = x_ref[...].astype(jnp.float32)
    m = x.shape[0]                      # bt * E * T rows in this tile
    bt = out_ref.shape[0]
    r = m // bt                         # E * T rows per batch element
    mxu_dtype = ws1_ref.dtype

    # Rows whose t-1 / t+1 neighbour falls outside their own (batch, edge)
    # block of length T get a zero contribution (== Conv1d zero padding).
    t_loc = lax.broadcasted_iota(jnp.int32, (m, 1), 0) % T
    first_t = t_loc == 0
    last_t = t_loc == T - 1
    ones = jnp.ones((m, 1), jnp.float32)

    def conv_relu(z, ws_ref):
        # im2col: [z[t-1] | z[t] | z[t+1] | 1] @ [w0; w1; w2; b] -> one MXU dot.
        z_m1 = jnp.where(first_t, 0.0, pltpu.roll(z, 1, 0))       # z[t-1]
        z_p1 = jnp.where(last_t, 0.0, pltpu.roll(z, m - 1, 0))    # z[t+1]
        z_cat = jnp.concatenate([z_m1, z, z_p1, ones], axis=-1)   # (m, 3Ci+1)
        y = jnp.dot(z_cat.astype(mxu_dtype), ws_ref[...],
                    preferred_element_type=jnp.float32)
        return jnp.maximum(y, 0.0)

    h = conv_relu(x, ws1_ref)
    h = conv_relu(h, ws2_ref)
    h = conv_relu(h, ws3_ref)                                     # (m, O) f32

    # Pooling + classifier on the MXU: logits[b] = sum_r h3[b, r, :] @ wf[r].
    o = h.shape[-1]
    ht = jnp.transpose(h.reshape(bt, r, o), (1, 0, 2))            # (r, bt, O)
    u = jnp.einsum('rbo,roc->rbc', ht.astype(wf_ref.dtype), wf_ref[...],
                   preferred_element_type=jnp.float32)            # (r, bt, C)
    out_ref[...] = (jnp.sum(u, axis=0) + bc_ref[...]).astype(out_ref.dtype)


def _pick_batch_tile(B, E, T, batch_tile, target_rows=4096):
    """Pick a batch tile: tiles are always whole (batch, edge) T-blocks, and
    second-minor BlockSpec dims stay 8-aligned (or cover the full array)."""
    if batch_tile is None:
        cands = [d for d in range(8, B, 8)
                 if B % d == 0 and d * E * T <= target_rows]
        return max(cands) if cands else B
    if B % batch_tile:
        raise ValueError("batch_tile must divide the batch size")
    if batch_tile != B and (batch_tile % 8 != 0 or (batch_tile * E * T) % 8):
        raise ValueError("batch_tile must be a multiple of 8 unless it equals "
                         "the full batch (sublane tiling constraint)")
    return batch_tile


@functools.partial(jax.jit, static_argnames=("batch_tile", "compute_dtype"))
def hyperedge_convolution_forward(x5, params, batch_tile=None,
                                  compute_dtype=jnp.bfloat16):
    """x5: (B, E, N, T, 1) float32 -> logits (B, num_classes) float32."""
    w1, b1, w2, b2, w3, b3, wc, bc = params
    B, E, N, T, _ = x5.shape
    O = w3.shape[-1]
    C = wc.shape[-1]
    if (O * T) % N != 0:
        raise ValueError("output_dim * timeseries must be divisible by "
                         "node_number (PyTorch's .view would raise too)")
    G = (O * T) // N
    if wc.shape[0] != E * G:
        raise ValueError(f"classifier expects {E * G} features, got "
                         f"{wc.shape[0]}")

    bt = _pick_batch_tile(B, E, T, batch_tile)
    rows_blk = bt * E * T

    # Channels-last rows ordered (batch, edge, t).
    # TODO(synk): at production sizes fold this transpose into the kernel
    #             (read (bt, E, N, T) blocks and swap the minor dims in VMEM)
    #             to avoid one extra HBM round trip of the activations.
    x2d = jnp.transpose(x5[..., 0], (0, 1, 3, 2)).reshape(B * E * T, N)
    x2d = x2d.astype(compute_dtype)

    # im2col conv weights: rows = [tap@t-1 ; tap@t ; tap@t+1 ; bias].
    def stack_taps(w, b):
        return jnp.concatenate([w[0], w[1], w[2], b],
                               axis=0).astype(compute_dtype)
    ws1 = stack_taps(w1, b1)            # (3N+1, H)
    ws2 = stack_taps(w2, b2)            # (3H+1, H)
    ws3 = stack_taps(w3, b3)            # (3H+1, O)

    # Fold node-mean pooling (1/N + NCT flatten order) into the classifier:
    # wf[e*T + t, o, c] = wc[e*G + (o*T + t) % G, c] / N.
    e_i = jnp.arange(E)[:, None, None]
    t_i = jnp.arange(T)[None, :, None]
    o_i = jnp.arange(O)[None, None, :]
    rows = (e_i * G + (o_i * T + t_i) % G).reshape(E * T, O)
    wf = (wc[rows] / N).astype(compute_dtype)                     # (E*T, O, C)
    bcf = bc.astype(jnp.float32)

    resident = lambda a: pl.BlockSpec(a.shape, lambda i: (0,) * a.ndim)
    return pl.pallas_call(
        functools.partial(_fused_kernel, T=T),
        out_shape=jax.ShapeDtypeStruct((B, C), jnp.float32),
        grid=(B // bt,),
        in_specs=[
            pl.BlockSpec((rows_blk, N), lambda i: (i, 0)),
            resident(ws1), resident(ws2), resident(ws3),
            resident(wf), resident(bcf),
        ],
        out_specs=pl.BlockSpec((bt, C), lambda i: (i, 0)),
        compiler_params=pltpu.CompilerParams(
            dimension_semantics=("parallel",),
            vmem_limit_bytes=32 * 1024 * 1024),
    )(x2d, ws1, ws2, ws3, wf, bcf)


# ----------------------------------------------------------------------------
# Pure-JAX reference (NCT layout, mirrors the PyTorch math) for verification.
# ----------------------------------------------------------------------------
def reference_forward(x5, params):
    w1, b1, w2, b2, w3, b3, wc, bc = params
    B, E, N, T, _ = x5.shape
    x = x5[..., 0]                                                # (B, E, N, T)

    def conv_nct(z, w, b):                                        # z: (B, C, T)
        zp = jnp.pad(z, ((0, 0), (0, 0), (1, 1)))
        Tz = z.shape[-1]
        y = sum(jnp.einsum('bct,co->bot', zp[:, :, k:k + Tz], w[k])
                for k in range(3))
        return y + b[0][None, :, None]

    outs = []
    for e in range(E):
        h = jax.nn.relu(conv_nct(x[:, e], w1, b1))
        h = jax.nn.relu(conv_nct(h, w2, b2))
        h = jax.nn.relu(conv_nct(h, w3, b3))                      # (B, O, T)
        outs.append(h.reshape(B, N, -1).mean(axis=1))
    out = jnp.concatenate(outs, axis=1)                           # (B, E*G)
    return out @ wc + bc


if __name__ == "__main__":
    # Module sizes: input_dim = node_number (Conv1d channels), kernel=3, pad=1.
    E, N, T = 3, 4, 16                # edges, nodes (=input_dim), timeseries
    H, O, C = 8, 8, 5                 # hidden_dim, output_dim, num_classes
    G = (O * T) // N
    F = E * G

    key = jax.random.PRNGKey(0)
    ks = jax.random.split(key, 10)
    scale = 0.1
    params = (
        scale * jax.random.normal(ks[0], (3, N, H), jnp.float32),  # conv1 w (k,Cin,Cout)
        scale * jax.random.normal(ks[1], (1, H), jnp.float32),     # conv1 b
        scale * jax.random.normal(ks[2], (3, H, H), jnp.float32),  # conv2 w
        scale * jax.random.normal(ks[3], (1, H), jnp.float32),     # conv2 b
        scale * jax.random.normal(ks[4], (3, H, O), jnp.float32),  # conv3 w
        scale * jax.random.normal(ks[5], (1, O), jnp.float32),     # conv3 b
        scale * jax.random.normal(ks[6], (F, C), jnp.float32),     # classifier w
        scale * jax.random.normal(ks[7], (1, C), jnp.float32),     # classifier b
    )

    # Check 1: tiny batch, single grid step, f32 MXU operands (tight tolerance).
    x_small = jax.random.normal(ks[8], (2, E, N, T, 1), jnp.float32)
    out = jax.block_until_ready(
        hyperedge_convolution_forward(x_small, params,
                                      compute_dtype=jnp.float32))
    ref = reference_forward(x_small, params)
    err = float(jnp.max(jnp.abs(out - ref)))
    assert out.shape == (2, C), out.shape
    assert err < 2e-3, f"f32 mismatch vs reference: {err}"

    # Check 2: larger batch -> 2-step parallel grid (batch tile 8), bf16 MXU
    # operands with f32 accumulation (loosened tolerance).
    x_big = jax.random.normal(ks[9], (16, E, N, T, 1), jnp.float32)
    out = jax.block_until_ready(hyperedge_convolution_forward(x_big, params))
    ref = reference_forward(x_big, params)
    err = float(jnp.max(jnp.abs(out - ref)))
    assert out.shape == (16, C), out.shape
    assert err < 3e-2, f"bf16 mismatch vs reference: {err}"

    print("KERNEL_OK")
</pallas_src>

<mosaic_0001>
module attributes {stable_mosaic.version = 11 : i64} {
  func.func @_fused_kernel(%arg0: i32, %arg1: memref<96x4xf32, #tpu.memory_space<vmem>>, %arg2: memref<13x8xf32, #tpu.memory_space<vmem>>, %arg3: memref<25x8xf32, #tpu.memory_space<vmem>>, %arg4: memref<25x8xf32, #tpu.memory_space<vmem>>, %arg5: memref<48x8x5xf32, #tpu.memory_space<vmem>>, %arg6: memref<1x5xf32, #tpu.memory_space<vmem>>, %arg7: memref<2x5xf32, #tpu.memory_space<vmem>>) attributes {dimension_semantics = [#tpu.dimension_semantics<parallel>], iteration_bounds = array<i64: 1>, scalar_prefetch = 0 : i64, scratch_operands = 0 : i64, tpu.core_type = #tpu.core_type<tc>, window_params = [{transform_indices = @transform_0, window_bounds = array<i64: 96, 4>}, {pipeline_mode = #tpu.pipeline_mode<synchronous>, transform_indices = @transform_1, window_bounds = array<i64: 13, 8>}, {pipeline_mode = #tpu.pipeline_mode<synchronous>, transform_indices = @transform_2, window_bounds = array<i64: 25, 8>}, {pipeline_mode = #tpu.pipeline_mode<synchronous>, transform_indices = @transform_3, window_bounds = array<i64: 25, 8>}, {pipeline_mode = #tpu.pipeline_mode<synchronous>, transform_indices = @transform_4, window_bounds = array<i64: 48, 8, 5>}, {pipeline_mode = #tpu.pipeline_mode<synchronous>, transform_indices = @transform_5, window_bounds = array<i64: 1, 5>}, {transform_indices = @transform_6, window_bounds = array<i64: 2, 5>}]} {
    %c0 = arith.constant 0 : index
    %c0_0 = arith.constant 0 : index
    %0 = vector.load %arg1[%c0, %c0_0] : memref<96x4xf32, #tpu.memory_space<vmem>>, vector<96x4xf32>
    %1 = tpu.iota {dimensions = array<i32: 0>} : vector<96x1xi32>
    %c16_i32 = arith.constant 16 : i32
    %c0_i32 = arith.constant 0 : i32
    %2 = arith.cmpi eq, %c16_i32, %c0_i32 : i32
    %c1_i32 = arith.constant 1 : i32
    %3 = arith.select %2, %c1_i32, %c16_i32 : i32
    %4 = vector.broadcast %3 : i32 to vector<96x1xi32>
    %5 = arith.remsi %1, %4 : vector<96x1xi32>
    %c0_i32_1 = arith.constant 0 : i32
    %6 = vector.broadcast %c0_i32_1 : i32 to vector<96x1xi32>
    %7 = arith.cmpi ne, %5, %6 : vector<96x1xi32>
    %c0_i32_2 = arith.constant 0 : i32
    %8 = vector.broadcast %c0_i32_2 : i32 to vector<96x1xi32>
    %9 = arith.cmpi slt, %5, %8 : vector<96x1xi32>
    %c0_i32_3 = arith.constant 0 : i32
    %10 = arith.cmpi slt, %3, %c0_i32_3 : i32
    %11 = vector.broadcast %10 : i1 to vector<96x1xi1>
    %12 = vector.broadcast %11 : vector<96x1xi1> to vector<96x1xi1>
    %13 = arith.xori %9, %12 : vector<96x1xi1>
    %14 = arith.andi %13, %7 : vector<96x1xi1>
    %15 = vector.broadcast %3 : i32 to vector<96x1xi32>
    %16 = arith.addi %5, %15 : vector<96x1xi32>
    %17 = arith.select %14, %16, %5 : vector<96x1xi1>, vector<96x1xi32>
    %c0_i32_4 = arith.constant 0 : i32
    %18 = vector.broadcast %c0_i32_4 : i32 to vector<96x1xi32>
    %19 = arith.cmpi eq, %17, %18 : vector<96x1xi32>
    %c15_i32 = arith.constant 15 : i32
    %20 = vector.broadcast %c15_i32 : i32 to vector<96x1xi32>
    %21 = arith.cmpi eq, %17, %20 : vector<96x1xi32>
    %cst = arith.constant 1.000000e+00 : f32
    %22 = vector.broadcast %cst : f32 to vector<96x1xf32>
    %c1_i32_5 = arith.constant 1 : i32
    %23 = tpu.dynamic_rotate %0 by %c1_i32_5 dim 0 : vector<96x4xf32>, i32 -> vector<96x4xf32>
    %cst_6 = arith.constant 0.000000e+00 : f32
    %24 = vector.shape_cast %19 : vector<96x1xi1> to vector<96x1xi1>
    %25 = vector.broadcast %24 : vector<96x1xi1> to vector<96x4xi1>
    %26 = vector.broadcast %cst_6 : f32 to vector<96x4xf32>
    %27 = arith.select %25, %26, %23 : vector<96x4xi1>, vector<96x4xf32>
    %c95_i32 = arith.constant 95 : i32
    %28 = tpu.dynamic_rotate %0 by %c95_i32 dim 0 : vector<96x4xf32>, i32 -> vector<96x4xf32>
    %cst_7 = arith.constant 0.000000e+00 : f32
    %29 = vector.shape_cast %21 : vector<96x1xi1> to vector<96x1xi1>
    %30 = vector.broadcast %29 : vector<96x1xi1> to vector<96x4xi1>
    %31 = vector.broadcast %cst_7 : f32 to vector<96x4xf32>
    %32 = arith.select %30, %31, %28 : vector<96x4xi1>, vector<96x4xf32>
    %33 = tpu.concatenate %27, %0, %32, %22 in 1 : vector<96x4xf32>, vector<96x4xf32>, vector<96x4xf32>, vector<96x1xf32> -> vector<96x13xf32>
    %c0_8 = arith.constant 0 : index
    %c0_9 = arith.constant 0 : index
    %34 = vector.load %arg2[%c0_8, %c0_9] : memref<13x8xf32, #tpu.memory_space<vmem>>, vector<13x8xf32>
    %cst_10 = arith.constant dense<0.000000e+00> : vector<96x8xf32>
    %35 = tpu.matmul %33, %34, %cst_10 {dimension_numbers = #tpu.dot_dimension_numbers<[1], [0], [0], [1], [0, 0, 1, 1], [], []>} : vector<96x13xf32>, vector<13x8xf32>, vector<96x8xf32> -> vector<96x8xf32>
    %cst_11 = arith.constant 0.000000e+00 : f32
    %36 = vector.broadcast %cst_11 : f32 to vector<96x8xf32>
    %37 = arith.maximumf %35, %36 : vector<96x8xf32>
    %c1_i32_12 = arith.constant 1 : i32
    %38 = tpu.dynamic_rotate %37 by %c1_i32_12 dim 0 : vector<96x8xf32>, i32 -> vector<96x8xf32>
    %cst_13 = arith.constant 0.000000e+00 : f32
    %39 = vector.shape_cast %19 : vector<96x1xi1> to vector<96x1xi1>
    %40 = vector.broadcast %39 : vector<96x1xi1> to vector<96x8xi1>
    %41 = vector.broadcast %cst_13 : f32 to vector<96x8xf32>
    %42 = arith.select %40, %41, %38 : vector<96x8xi1>, vector<96x8xf32>
    %c95_i32_14 = arith.constant 95 : i32
    %43 = tpu.dynamic_rotate %37 by %c95_i32_14 dim 0 : vector<96x8xf32>, i32 -> vector<96x8xf32>
    %cst_15 = arith.constant 0.000000e+00 : f32
    %44 = vector.shape_cast %21 : vector<96x1xi1> to vector<96x1xi1>
    %45 = vector.broadcast %44 : vector<96x1xi1> to vector<96x8xi1>
    %46 = vector.broadcast %cst_15 : f32 to vector<96x8xf32>
    %47 = arith.select %45, %46, %43 : vector<96x8xi1>, vector<96x8xf32>
    %48 = tpu.concatenate %42, %37, %47, %22 in 1 : vector<96x8xf32>, vector<96x8xf32>, vector<96x8xf32>, vector<96x1xf32> -> vector<96x25xf32>
    %c0_16 = arith.constant 0 : index
    %c0_17 = arith.constant 0 : index
    %49 = vector.load %arg3[%c0_16, %c0_17] : memref<25x8xf32, #tpu.memory_space<vmem>>, vector<25x8xf32>
    %cst_18 = arith.constant dense<0.000000e+00> : vector<96x8xf32>
    %50 = tpu.matmul %48, %49, %cst_18 {dimension_numbers = #tpu.dot_dimension_numbers<[1], [0], [0], [1], [0, 0, 1, 1], [], []>} : vector<96x25xf32>, vector<25x8xf32>, vector<96x8xf32> -> vector<96x8xf32>
    %cst_19 = arith.constant 0.000000e+00 : f32
    %51 = vector.broadcast %cst_19 : f32 to vector<96x8xf32>
    %52 = arith.maximumf %50, %51 : vector<96x8xf32>
    %c1_i32_20 = arith.constant 1 : i32
    %53 = tpu.dynamic_rotate %52 by %c1_i32_20 dim 0 : vector<96x8xf32>, i32 -> vector<96x8xf32>
    %cst_21 = arith.constant 0.000000e+00 : f32
    %54 = vector.shape_cast %19 : vector<96x1xi1> to vector<96x1xi1>
    %55 = vector.broadcast %54 : vector<96x1xi1> to vector<96x8xi1>
    %56 = vector.broadcast %cst_21 : f32 to vector<96x8xf32>
    %57 = arith.select %55, %56, %53 : vector<96x8xi1>, vector<96x8xf32>
    %c95_i32_22 = arith.constant 95 : i32
    %58 = tpu.dynamic_rotate %52 by %c95_i32_22 dim 0 : vector<96x8xf32>, i32 -> vector<96x8xf32>
    %cst_23 = arith.constant 0.000000e+00 : f32
    %59 = vector.shape_cast %21 : vector<96x1xi1> to vector<96x1xi1>
    %60 = vector.broadcast %59 : vector<96x1xi1> to vector<96x8xi1>
    %61 = vector.broadcast %cst_23 : f32 to vector<96x8xf32>
    %62 = arith.select %60, %61, %58 : vector<96x8xi1>, vector<96x8xf32>
    %63 = tpu.concatenate %57, %52, %62, %22 in 1 : vector<96x8xf32>, vector<96x8xf32>, vector<96x8xf32>, vector<96x1xf32> -> vector<96x25xf32>
    %c0_24 = arith.constant 0 : index
    %c0_25 = arith.constant 0 : index
    %64 = vector.load %arg4[%c0_24, %c0_25] : memref<25x8xf32, #tpu.memory_space<vmem>>, vector<25x8xf32>
    %cst_26 = arith.constant dense<0.000000e+00> : vector<96x8xf32>
    %65 = tpu.matmul %63, %64, %cst_26 {dimension_numbers = #tpu.dot_dimension_numbers<[1], [0], [0], [1], [0, 0, 1, 1], [], []>} : vector<96x25xf32>, vector<25x8xf32>, vector<96x8xf32> -> vector<96x8xf32>
    %cst_27 = arith.constant 0.000000e+00 : f32
    %66 = vector.broadcast %cst_27 : f32 to vector<96x8xf32>
    %67 = arith.maximumf %65, %66 : vector<96x8xf32>
    %68 = vector.shape_cast %67 : vector<96x8xf32> to vector<2x48x8xf32>
    %69 = tpu.transpose %68, [1, 0, 2] : vector<2x48x8xf32> -> vector<48x2x8xf32>
    %c0_28 = arith.constant 0 : index
    %c0_29 = arith.constant 0 : index
    %c0_30 = arith.constant 0 : index
    %70 = vector.load %arg5[%c0_28, %c0_29, %c0_30] : memref<48x8x5xf32, #tpu.memory_space<vmem>>, vector<48x8x5xf32>
    "tpu.trace_start"() <{level = 10 : i32, message = "rbo,roc->rbc"}> : () -> ()
    %cst_31 = arith.constant dense<0.000000e+00> : vector<48x2x5xf32>
    %71 = tpu.matmul %69, %70, %cst_31 {dimension_numbers = #tpu.dot_dimension_numbers<[2], [1], [1], [2], [0, 0, 0, 1, 1, 2], [0], [0]>} : vector<48x2x8xf32>, vector<48x8x5xf32>, vector<48x2x5xf32> -> vector<48x2x5xf32>
    "tpu.trace_stop"() : () -> ()
    %cst_32 = arith.constant dense<0.000000e+00> : vector<2x5xf32>
    %72 = vector.multi_reduction <add>, %71, %cst_32 [0] : vector<48x2x5xf32> to vector<2x5xf32>
    %c0_33 = arith.constant 0 : index
    %c0_34 = arith.constant 0 : index
    %73 = vector.load %arg6[%c0_33, %c0_34] : memref<1x5xf32, #tpu.memory_space<vmem>>, vector<1x5xf32>
    %74 = vector.broadcast %73 : vector<1x5xf32> to vector<2x5xf32>
    %75 = arith.addf %72, %74 : vector<2x5xf32>
    %c0_35 = arith.constant 0 : index
    %c0_36 = arith.constant 0 : index
    %76 = vector.load %arg7[%c0_35, %c0_36] : memref<2x5xf32, #tpu.memory_space<vmem>>, vector<2x5xf32>
    tpu.vector_store %arg7[%c0_35, %c0_36], %75 {strides = array<i32>} : memref<2x5xf32, #tpu.memory_space<vmem>>, vector<2x5xf32>,
    return
  }
  func.func @transform_0(%arg0: i32) -> (i32, i32) {
    %c0_i32 = arith.constant 0 : i32
    %c0_i32_0 = arith.constant 0 : i32
    return %arg0, %c0_i32 : i32, i32
  }
  func.func @transform_1(%arg0: i32) -> (i32, i32) {
    %c0_i32 = arith.constant 0 : i32
    %c0_i32_0 = arith.constant 0 : i32
    %c0_i32_1 = arith.constant 0 : i32
    return %c0_i32, %c0_i32_0 : i32, i32
  }
  func.func @transform_2(%arg0: i32) -> (i32, i32) {
    %c0_i32 = arith.constant 0 : i32
    %c0_i32_0 = arith.constant 0 : i32
    %c0_i32_1 = arith.constant 0 : i32
    return %c0_i32, %c0_i32_0 : i32, i32
  }
  func.func @transform_3(%arg0: i32) -> (i32, i32) {
    %c0_i32 = arith.constant 0 : i32
    %c0_i32_0 = arith.constant 0 : i32
    %c0_i32_1 = arith.constant 0 : i32
    return %c0_i32, %c0_i32_0 : i32, i32
  }
  func.func @transform_4(%arg0: i32) -> (i32, i32, i32) {
    %c0_i32 = arith.constant 0 : i32
    %c0_i32_0 = arith.constant 0 : i32
    %c0_i32_1 = arith.constant 0 : i32
    %c0_i32_2 = arith.constant 0 : i32
    return %c0_i32, %c0_i32_0, %c0_i32_1 : i32, i32, i32
  }
  func.func @transform_5(%arg0: i32) -> (i32, i32) {
    %c0_i32 = arith.constant 0 : i32
    %c0_i32_0 = arith.constant 0 : i32
    %c0_i32_1 = arith.constant 0 : i32
    return %c0_i32, %c0_i32_0 : i32, i32
  }
  func.func @transform_6(%arg0: i32) -> (i32, i32) {
    %c0_i32 = arith.constant 0 : i32
    %c0_i32_0 = arith.constant 0 : i32
    return %arg0, %c0_i32 : i32, i32
  }
}

</mosaic_0001>

<bundles_post_ra>
// kernel: hyperedge_convolution_forward.1
= control target key start
LH: loop header
LB: loop body
LE: loop exit
PB: predicated region body
PF: predicated region fallthrough
CT: control target
= control target key end

     0   :  { %v36_v3 = vlaneseq  ;;  %s6067_s27 = smov 4   ;;  %s6068_s8 = smov 8   ;;  %s7410_s0 = inlined_call_operand.vmem [shape: f32[96,4], index: 0, kind: input, shape index: {}]   ;;  %s7411_s1 = inlined_call_operand.vmem [shape: f32[13,8], index: 1, kind: input, shape index: {}]   ;;  %s7412_s2 = inlined_call_operand.vmem [shape: f32[25,8], index: 2, kind: input, shape index: {}]   ;;  %s7413_s3 = inlined_call_operand.vmem [shape: f32[25,8], index: 3, kind: input, shape index: {}]   ;;  %s7414_s4 = inlined_call_operand.vmem [shape: f32[48,8,5], index: 4, kind: input, shape index: {}]   ;;  %s7415_s5 = inlined_call_operand.vmem [shape: f32[1,5], index: 5, kind: input, shape index: {}]   ;;  %s7416_s6 = inlined_call_operand.hbm [shape: f32[2,5], index: 6, kind: output, shape index: {}]  }
   0x1   :  { %v6113_v0 = vld [vmem:[%s7410_s0] sm:$0xff]  ;;  %v6118_v1 = vld [vmem:[%s7410_s0 + $0x18] sm:$0xff]  ;;  %v6123_v2 = vld [vmem:[%s7410_s0 + $0x8] sm:$0xff] }
   0x2   :  { %351 = vrot.lane.b32.xlu0 %v6113_v0, %s6067_s27  ;;  %v278_v4 = vrot.slane %v6113_v0, 1  ;;  %357 = vrot.lane.b32.xlu1 %v6118_v1, %s6067_s27  ;;  %v26_v5 = vld [vmem:[%s7410_s0 + $0x10] sm:$0xff]  ;;  %v6136_v6 = vld [vmem:[%s7410_s0 + $0x20] sm:$0xff]  ;;  %v279_v7 = vrot.slane %v6123_v2, 1  ;;  %v6139_v8 = vshrl.u32 %v36_v3, 7  ;;  %v281_v9 = vrot.slane %v6118_v1, 1 }
   0x3   :  { %v280_v10 = vrot.slane %v26_v5, 1  ;;  %v282_v13 = vrot.slane %v6136_v6, 1 }
   0x4   :  { %vm7418_vm0 = vcmp.lt.s32.totalorder %v6139_v8, 7  ;;  %v38_v11 = vadd.s32 8, %v6139_v8  ;;  %v40_v12 = vadd.s32 24, %v6139_v8 }
   0x5   :  { %v301_v14 = vsel %vm7418_vm0, %v278_v4, %v279_v7  ;;  %v300_v16 = vsel %vm7418_vm0, %v279_v7, %v280_v10 }
   0x6   :  { %353 = vrot.lane.b32.xlu0 %v6123_v2, %s6067_s27  ;;  %399 = vrot.lane.b32.xlu1 %v301_v14, %s6068_s8  ;;  %v60_v15 = vand.u32 15, %v38_v11  ;;  %v74_v17 = vand.u32 15, %v40_v12 }
   0x7   :  { %11 = vsyncpa [#allocation3], 0  ;;  %v298_v20 = vsel %vm7418_vm0, %v281_v9, %v282_v13  ;;  %v42_v21 = vadd.s32 40, %v6139_v8  ;;  %v29_v23 = vld [vmem:[%s7410_s0 + $0x28] sm:$0xff]  ;;  %v30_v24 = vld [vmem:[%s7410_s0 + $0x30] sm:$0xff]  ;;  %v299_v25 = vsel %vm7418_vm0, %v280_v10, %v281_v9  ;;  %v217_v26 = vrot.slane %v6113_v0, 7 }
   0x8   :  { %vm6155_vm1 = vcmp.eq.s32.totalorder %v60_v15, 15  ;;  %vm6159_vm2 = vcmp.eq.s32.totalorder %v74_v17, 15  ;;  %v220_v27 = vrot.slane %v6118_v1, 7  ;;  %v219_v28 = vrot.slane %v26_v5, 7  ;;  %v6185_v30 = vld [vmem:[%s7410_s0 + $0x58] sm:$0xff]  ;;  %v474_v38 = vld [vmem:[%s7411_s1] sm:$0xff] }
   0x9   :  { %v328_v22 = vsel %vm6155_vm1, 0.0, %v300_v16  ;;  %v330_v29 = vsel %vm6159_vm2, 0.0, %v298_v20  ;;  %v283_v31 = vrot.slane %v29_v23, 1  ;;  %v88_v32 = vand.u32 15, %v42_v21  ;;  %v475_v36 = vld [vmem:[%s7411_s1 + $0x8] sm:$0x1f] }
   0xa   :  { %355 = vrot.lane.b32.xlu0 %v26_v5, %s6067_s27  ;;  %401 = vrot.lane.b32.xlu1 %v328_v22, %s6068_s8  ;;  %v284_v33 = vrot.slane %v30_v24, 1  ;;  %v228_v34 = vrot.slane %v6185_v30, 7  ;;  %v218_v35 = vrot.slane %v6123_v2, 7  ;;  %v44_v37 = vadd.s32 56, %v6139_v8  ;;  %v31_v41 = vld [vmem:[%s7410_s0 + $0x38] sm:$0xff]  ;;  %v32_v45 = vld [vmem:[%s7410_s0 + $0x40] sm:$0xff] }
   0xb   :  { %vm7417_vm3 = vcmp.lt.s32.totalorder %v6139_v8, 1  ;;  %vm513_vm4 = vcmask 1044480   ;;  %vm6199_vm5 = vcmp.eq.s32.totalorder %v88_v32, 15  ;;  %v222_v44 = vrot.slane %v29_v23, 7  ;;  %v33_v49 = vld [vmem:[%s7410_s0 + $0x48] sm:$0xff]  ;;  %s6069_s10 = smov 16  }
   0xc   :  { %v296_v40 = vsel %vm7418_vm0, %v283_v31, %v284_v33  ;;  %v6210_v42 = vsel %vm7417_vm3, %v228_v34, %v217_v26  ;;  %v6214_v43 = vsel %vm7417_vm3, %v219_v28, %v220_v27  ;;  %5723 = vmatprep.subr.msk.mxu0 %vm513_vm4, %v475_v36  ;;  %v6223_v46 = vsel %vm7417_vm3, %v217_v26, %v218_v35 }
   0xd   :  { %5724 = vmatpush3.msk.msra.mxu0 %vm513_vm4, %v475_v36  ;;  %v297_v47 = vsel %vm7418_vm0, %v282_v13, %v283_v31  ;;  %v224_v48 = vrot.slane %v31_v41, 7  ;;  %v6233_v50 = vsel %vm7417_vm3, %v218_v35, %v219_v28  ;;  %v332_v51 = vsel %vm6199_vm5, 0.0, %v296_v40 }
   0xe   :  { %403 = vrot.lane.b32.xlu0 %v299_v25, %s6068_s8  ;;  %405 = vrot.lane.b32.xlu1 %v330_v29, %s6068_s8  ;;  %v285_v52 = vrot.slane %v31_v41, 1  ;;  %v226_v53 = vrot.slane %v33_v49, 7  ;;  %v221_v54 = vrot.slane %v6136_v6, 7  ;;  %v102_v55 = vand.u32 15, %v44_v37 }
   0xf   :  { %5725 = vmatprep.subr.mxu0 %v474_v38  ;;  %v286_v56 = vrot.slane %v32_v45, 1  ;;  %v223_v57 = vrot.slane %v30_v24, 7  ;;  %v225_v58 = vrot.slane %v32_v45, 7  ;;  %v7430_v2 = vmov 0 }
  0x10   :  { %5726 = vmatpush3.msra.mxu0 %v474_v38  ;;  %v6241_v59 = vsel %vm7417_vm3, %v220_v27, %v221_v54  ;;  %v6245_v60 = vsel %vm7417_vm3, %v221_v54, %v222_v44  ;;  %vm6264_vm6 = vcmp.eq.s32.totalorder %v102_v55, 15  ;;  %v46_v5 = vadd.s32 72, %v6139_v8 }
  0x11   :  { %v6250_v61 = vsel %vm7417_vm3, %v222_v44, %v223_v57  ;;  %v6254_v62 = vsel %vm7417_vm3, %v223_v57, %v224_v48  ;;  %v6258_v63 = vsel %vm7417_vm3, %v224_v48, %v225_v58  ;;  %v6262_v1 = vsel %vm7417_vm3, %v225_v58, %v226_v53 }
  0x12   :  { %359 = vrot.lane.b32.xlu0 %v6136_v6, %s6067_s27  ;;  %361 = vrot.lane.b32.xlu1 %v29_v23, %s6067_s27  ;;  %v7431_v2 = vsel %vm6264_vm6, 4294967295, %v7430_v2  ;;  %v294_v3 = vsel %vm7418_vm0, %v285_v52, %v286_v56  ;;  %v34_v6 = vld [vmem:[%s7410_s0 + $0x50] sm:$0xff]  ;;  %v295_v7 = vsel %vm7418_vm0, %v284_v33, %v285_v52  ;;  %v287_v11 = vrot.slane %v33_v49, 1 }
  0x13   :  { %v227_v9 = vrot.slane %v34_v6, 7  ;;  %v334_v10 = vsel %vm6264_vm6, 0.0, %v294_v3  ;;  %v116_v12 = vand.u32 15, %v46_v5  ;;  %v288_v13 = vrot.slane %v34_v6, 1 }
  0x14   :  { %v48_v20 = vadd.s32 88, %v6139_v8  ;;  %v293_v21 = vsel %vm7418_vm0, %v286_v56, %v287_v11  ;;  %v289_v23 = vrot.slane %v6185_v30, 1  ;;  %v53_v0 = vand.u32 15, %v6139_v8 }
  0x15   :  { %v6282_v14 = vsel %vm7417_vm3, %v226_v53, %v227_v9  ;;  %v6286_v15 = vsel %vm7417_vm3, %v227_v9, %v228_v34  ;;  %vm6290_vm7 = vcmp.eq.s32.totalorder %v116_v12, 15  ;;  %v292_v17 = vsel %vm7418_vm0, %v287_v11, %v288_v13 }
  0x16   :  { %407 = vrot.lane.b32.xlu0 %v297_v47, %s6068_s8  ;;  %409 = vrot.lane.b32.xlu1 %v332_v51, %s6068_s8  ;;  %v336_v22 = vsel %vm6290_vm7, 0.0, %v292_v17  ;;  %v302_v26 = vsel %vm7418_vm0, %v289_v23, %v278_v4  ;;  %v291_v27 = vsel %vm7418_vm0, %v288_v13, %v289_v23  ;;  %v39_v29 = vadd.s32 16, %v6139_v8 }
  0x17   :  { %vm6325_vm9 = vcmp.eq.s32.totalorder %v53_v0, 0  ;;  %vm435_vm10 = vcmask 31744   ;;  %vm7420_vm11 = vcmask 64512   ;;  %vm461_vm12 = vcmask 97280  }
  0x18   :  { %v266_v32 = vsel %vm6325_vm9, 0.0, %v6210_v42  ;;  %v67_v33 = vand.u32 15, %v39_v29  ;;  %vm476_vm13 = vcmask 105472   ;;  %v41_v40 = vadd.s32 32, %v6139_v8 }
  0x19   :  { %v43_v58 = vadd.s32 48, %v6139_v8  ;;  %v47_v0 = vadd.s32 80, %v6139_v8 }
  0x1a   :  { %363 = vrot.lane.b32.xlu0 %v30_v24, %s6067_s27  ;;  %365 = vrot.lane.b32.xlu1 %v31_v41, %s6067_s27  ;;  %v130_v24 = vand.u32 15, %v48_v20  ;;  %vm6333_vm14 = vcmp.eq.s32.totalorder %v67_v33, 0 }
  0x1c   :  { %vm6306_vm8 = vcmp.eq.s32.totalorder %v130_v24, 15 }
  0x1d   :  { %v338_v28 = vsel %vm6306_vm8, 0.0, %v302_v26 }
  0x1e   :  { %411 = vrot.lane.b32.xlu0 %v295_v7, %s6068_s8  ;;  %413 = vrot.lane.b32.xlu1 %v334_v10, %s6068_s8  ;;  %v95_v7 = vand.u32 15, %v43_v58 }
  0x20   :  { %vm6372_vm4 = vcmp.eq.s32.totalorder %v95_v7, 0 }
  0x22   :  { %367 = vrot.lane.b32.xlu0 %v32_v45, %s6067_s27  ;;  %369 = vrot.lane.b32.xlu1 %v33_v49, %s6067_s27  ;;  %v268_v45 = vsel %vm6333_vm14, 0.0, %v6233_v50  ;;  %v81_v49 = vand.u32 15, %v41_v40 }
  0x24   :  { %vm6355_vm15 = vcmp.eq.s32.totalorder %v81_v49, 0 }
  0x26   :  { %415 = vrot.lane.b32.xlu0 %v293_v21, %s6068_s8  ;;  %417 = vrot.lane.b32.xlu1 %v336_v22, %s6068_s8  ;;  %v7442_v21 = vmov 0 }
  0x27   :  { %v7443_v21 = vsel %vm6372_vm4, 4294967295, %v7442_v21 }
  0x2a   :  { %371 = vrot.lane.b32.xlu0 %v34_v6, %s6067_s27  ;;  %373 = vrot.lane.b32.xlu1 %v6185_v30, %s6067_s27  ;;  %s6074_s27 = smov [#allocation2]  }
  0x2b   :  { %s5485_s28 = sshll.u32 %s6074_s27, 4  ;;  %s5486_s28 = int_to_ptr.vmem [resolvable:$true] %s5485_s28 }
  0x2c   :  { %s6045_s29 = scalar_lea.vmem %s5486_s28, 32  ;;  %p6050_p1 = scmp.lt.s32.totalorder %s5486_s28, %s5486_s28 }
  0x2d   :  { %p6046_p0 = scmp.ne.s32.totalorder %s5486_s28, %s6045_s29  ;;  %p6051_p2 = scmp.lt.s32.totalorder %s6045_s29, %s6045_s29 }
  0x2e   :  { %419 = vrot.lane.b32.xlu0 %v291_v27, %s6068_s8  ;;  %421 = vrot.lane.b32.xlu1 %v338_v28, %s6068_s8 }
  0x2f   :  { %p6052_p3 = por %p6051_p2, %p6050_p1 }
  0x31   :  { %p6053_p4 = pnand %p6052_p3, %p6046_p0 }
  0x74   :  { %v352_v31 = vpop.permute.xlu0 %351  ;;  %v358_v30 = vpop.permute.xlu1 %357 }
  0x75   :  { %v436_v35 = vsel %vm435_vm10, %v266_v32, %v352_v31  ;;  %v439_v54 = vsel %vm435_vm10, %v6214_v43, %v358_v30  ;;  %v270_v43 = vsel %vm6355_vm15, 0.0, %v6241_v59  ;;  %v45_v59 = vadd.s32 64, %v6139_v8 }
  0x77   :  { %v109_v26 = vand.u32 15, %v45_v59 }
  0x78   :  { %v354_v34 = vpop.permute.xlu0 %353  ;;  %v400_v36 = vpop.permute.xlu1 %399 }
  0x79   :  { %v449_v38 = vsel %vm7420_vm11, %v436_v35, %v400_v36  ;;  %v437_v42 = vsel %vm435_vm10, %v6223_v46, %v354_v34  ;;  %vm6390_vm3 = vcmp.eq.s32.totalorder %v109_v26, 0  ;;  %v123_v36 = vand.u32 15, %v47_v0 }
  0x7a   :  { %v462_v41 = vsel %vm461_vm12, %v449_v38, 1.0 }
  0x7b   :  { %5727 = vmatprep.mubr.msk.f32.mxu0 %vm476_vm13, %v462_v41  ;;  %vm6401_vm0 = vcmp.eq.s32.totalorder %v123_v36, 0 }
  0x7c   :  { %v356_v44 = vpop.permute.xlu0 %355  ;;  %v402_v47 = vpop.permute.xlu1 %401 }
  0x7d   :  { %v450_v48 = vsel %vm7420_vm11, %v437_v42, %v402_v47  ;;  %v438_v52 = vsel %vm435_vm10, %v268_v45, %v356_v44 }
  0x7e   :  { %v463_v51 = vsel %vm461_vm12, %v450_v48, 1.0 }
  0x7f   :  { %5728 = vmatmul.mubr.msk.f32.vlgmr.msra.gmra.mxu0 %vm476_vm13, %v463_v51  ;;  %v276_v51 = vsel %vm6401_vm0, 0.0, %v6282_v14 }
  0x80   :  { %v404_v53 = vpop.permute.xlu0 %403  ;;  %v406_v55 = vpop.permute.xlu1 %405 }
  0x81   :  { %v451_v46 = vsel %vm7420_vm11, %v438_v52, %v404_v53  ;;  %v452_v50 = vsel %vm7420_vm11, %v439_v54, %v406_v55 }
  0x82   :  { %v464_v56 = vsel %vm461_vm12, %v451_v46, 1.0  ;;  %v465_v3 = vsel %vm461_vm12, %v452_v50, 1.0 }
  0x83   :  { %5730 = vmatprep.mubr.msk.f32.mxu0 %vm476_vm13, %v464_v56 }
  0x84   :  { %v360_v5 = vpop.permute.xlu0 %359  ;;  %5731 = vmatmul.mubr.msk.f32.gmra.mxu0 %vm476_vm13, %v465_v3  ;;  %v362_v6 = vpop.permute.xlu1 %361 }
  0x85   :  { %v440_v9 = vsel %vm435_vm10, %v270_v43, %v360_v5  ;;  %v441_v11 = vsel %vm435_vm10, %v6245_v60, %v362_v6  ;;  %v272_v60 = vsel %vm6372_vm4, 0.0, %v6250_v61  ;;  %v863_v5 = vld [vmem:[%s7412_s2 + $0x18] sm:$0x1]  ;;  %v862_v6 = vld [vmem:[%s7412_s2 + $0x10] sm:$0xff] }
  0x88   :  { %v408_v10 = vpop.permute.xlu0 %407  ;;  %v410_v13 = vpop.permute.xlu1 %409 }
  0x89   :  { %v453_v12 = vsel %vm7420_vm11, %v440_v9, %v408_v10  ;;  %v454_v20 = vsel %vm7420_vm11, %v441_v11, %v410_v13  ;;  %v861_v10 = vld [vmem:[%s7412_s2 + $0x8] sm:$0xff] }
  0x8a   :  { %v466_v17 = vsel %vm461_vm12, %v453_v12, 1.0  ;;  %v467_v22 = vsel %vm461_vm12, %v454_v20, 1.0 }
  0x8b   :  { %5733 = vmatprep.mubr.msk.f32.mxu0 %vm476_vm13, %v466_v17 }
  0x8c   :  { %v364_v23 = vpop.permute.xlu0 %363  ;;  %5734 = vmatmul.mubr.msk.f32.gmra.mxu0 %vm476_vm13, %v467_v22  ;;  %v366_v24 = vpop.permute.xlu1 %365  ;;  %v860_v22 = vld [vmem:[%s7412_s2] sm:$0xff] }
  0x8d   :  { %v442_v27 = vsel %vm435_vm10, %v272_v60, %v364_v23  ;;  %v443_v29 = vsel %vm435_vm10, %v6254_v62, %v366_v24  ;;  %v274_v62 = vsel %vm6390_vm3, 0.0, %v6258_v63 }
  0x90   :  { %v412_v28 = vpop.permute.xlu0 %411  ;;  %v414_v30 = vpop.permute.xlu1 %413 }
  0x91   :  { %v455_v31 = vsel %vm7420_vm11, %v442_v27, %v412_v28  ;;  %v456_v33 = vsel %vm7420_vm11, %v443_v29, %v414_v30 }
  0x92   :  { %v468_v32 = vsel %vm461_vm12, %v455_v31, 1.0  ;;  %v469_v61 = vsel %vm461_vm12, %v456_v33, 1.0 }
  0x93   :  { %5736 = vmatprep.mubr.msk.f32.mxu0 %vm476_vm13, %v468_v32 }
  0x94   :  { %v368_v35 = vpop.permute.xlu0 %367  ;;  %5737 = vmatmul.mubr.msk.f32.gmra.mxu0 %vm476_vm13, %v469_v61  ;;  %v370_v38 = vpop.permute.xlu1 %369 }
  0x95   :  { %v444_v40 = vsel %vm435_vm10, %v274_v62, %v368_v35  ;;  %v445_v42 = vsel %vm435_vm10, %v6262_v1, %v370_v38 }
  0x98   :  { %v416_v41 = vpop.permute.xlu0 %415  ;;  %v418_v47 = vpop.permute.xlu1 %417 }
  0x99   :  { %v457_v45 = vsel %vm7420_vm11, %v444_v40, %v416_v41  ;;  %v458_v49 = vsel %vm7420_vm11, %v445_v42, %v418_v47 }
  0x9a   :  { %v470_v48 = vsel %vm461_vm12, %v457_v45, 1.0  ;;  %v471_v63 = vsel %vm461_vm12, %v458_v49, 1.0 }
  0x9b   :  { %5739 = vmatprep.mubr.msk.f32.mxu0 %vm476_vm13, %v470_v48 }
  0x9c   :  { %v372_v52 = vpop.permute.xlu0 %371  ;;  %5740 = vmatmul.mubr.msk.f32.gmra.mxu0 %vm476_vm13, %v471_v63  ;;  %v374_v53 = vpop.permute.xlu1 %373 }
  0x9d   :  { %v446_v1 = vsel %vm435_vm10, %v276_v51, %v372_v52  ;;  %v447_v54 = vsel %vm435_vm10, %v6286_v15, %v374_v53  ;;  %vm7419_vm10 = vcmask 1040384  }
  0x9e   :  { %5745 = vmatprep.subr.msk.mxu1 %vm7419_vm10, %v863_v5 }
  0x9f   :  { %5746 = vmatpush3.msk.msra.mxu1 %vm7419_vm10, %v863_v5 }
  0xa0   :  { %v420_v46 = vpop.permute.xlu0 %419  ;;  %v422_v56 = vpop.permute.xlu1 %421  ;;  %5747 = vmatprep.subr.mxu1 %v862_v6 }
  0xa1   :  { %v459_v55 = vsel %vm7420_vm11, %v446_v1, %v420_v46  ;;  %v460_v58 = vsel %vm7420_vm11, %v447_v54, %v422_v56  ;;  %5748 = vmatpush3.msra.mxu1 %v862_v6 }
  0xa2   :  { %v472_v50 = vsel %vm461_vm12, %v459_v55, 1.0  ;;  %v473_v3 = vsel %vm461_vm12, %v460_v58, 1.0  ;;  %5749 = vmatprep.subr.mxu1 %v861_v10  ;;  %vm7448_vm12 = vcmp.lt.s32.totalorder %v6139_v8, 7 }
  0xa3   :  { %5742 = vmatprep.mubr.msk.f32.mxu0 %vm476_vm13, %v472_v50  ;;  %5750 = vmatpush3.msra.mxu1 %v861_v10 }
  0xa4   :  { %5743 = vmatmul.mubr.msk.f32.gmra.mxu0 %vm476_vm13, %v473_v3  ;;  %5751 = vmatprep.subr.mxu1 %v860_v22  ;;  %vm7449_vm13 = vcmp.lt.s32.totalorder %v6139_v8, 1 }
  0xa5   :  { %5752 = vmatpush3.msra.mxu1 %v860_v22  ;;  %vm7450_vm10 = vmmov %vm7449_vm13 }
 0x13f   :  { %v5729_v14 = vpop.f32.mrf.mxu0 }
 0x140   :  { %v643_v15 = vmax.f32 %v5729_v14, 0.0 }
 0x141   :  { %v583_v43 = vpop.f32.mrf.mxu0 }
 0x142   :  { %v6433_v7 = vmax.f32 %v583_v43, 0.0  ;;  %740 = vrot.lane.b32.xlu1 %v643_v15, %s6068_s8  ;;  %v691_v11 = vrot.slane %v643_v15, 1  ;;  %v655_v20 = vrot.slane %v643_v15, 7 }
 0x144   :  { %v5732_v9 = vpop.f32.mrf.mxu0  ;;  %v654_v12 = vrot.slane %v6433_v7, 7  ;;  %v690_v13 = vrot.slane %v6433_v7, 1  ;;  %738 = vrot.lane.b32.xlu0 %v6433_v7, %s6068_s8 }
 0x145   :  { %v645_v17 = vmax.f32 %v5732_v9, 0.0 }
 0x146   :  { %v593_v59 = vpop.f32.mrf.mxu0  ;;  %v712_v60 = vsel %vm7448_vm12, %v690_v13, %v691_v11  ;;  %v6455_v24 = vsel %vm7449_vm13, %v654_v12, %v655_v20  ;;  %vm7451_vm12 = vmmov %vm7450_vm10  ;;  %vm7452_vm13 = vcmp.lt.s32.totalorder %v6139_v8, 7 }
 0x147   :  { %v644_v23 = vmax.f32 %v593_v59, 0.0  ;;  %744 = vrot.lane.b32.xlu1 %v645_v17, %s6068_s8  ;;  %v657_v26 = vrot.slane %v645_v17, 7  ;;  %v693_v32 = vrot.slane %v645_v17, 1  ;;  %vm7453_vm11 = vmmov %vm7452_vm13 }
 0x148   :  { %786 = vrot.lane.b32.xlu0 %v712_v60, %s6069_s10 }
 0x149   :  { %v656_v27 = vrot.slane %v644_v23, 7  ;;  %v692_v28 = vrot.slane %v644_v23, 1 }
 0x14b   :  { %v6460_v0 = vsel %vm7450_vm10, %v656_v27, %v657_v26  ;;  %v6464_v29 = vsel %vm7451_vm12, %v655_v20, %v656_v27  ;;  %v711_v35 = vsel %vm7452_vm13, %v691_v11, %v692_v28  ;;  %v710_v36 = vsel %vm7453_vm11, %v692_v28, %v693_v32  ;;  %vm7454_vm12 = vmmov %vm7450_vm10 }
 0x14c   :  { %v5735_v31 = vpop.f32.mrf.mxu0  ;;  %742 = vrot.lane.b32.xlu0 %v644_v23, %s6068_s8  ;;  %v715_v40 = vsel %vm6155_vm1, 0.0, %v711_v35  ;;  %vm7455_vm13 = vmmov %vm7453_vm11 }
 0x14d   :  { %v647_v30 = vmax.f32 %v5735_v31, 0.0 }
 0x14e   :  { %v603_v33 = vpop.f32.mrf.mxu0 }
 0x14f   :  { %v646_v61 = vmax.f32 %v603_v33, 0.0  ;;  %748 = vrot.lane.b32.xlu1 %v647_v30, %s6068_s8  ;;  %v659_v62 = vrot.slane %v647_v30, 7  ;;  %v695_v49 = vrot.slane %v647_v30, 1 }
 0x150   :  { %790 = vrot.lane.b32.xlu0 %v710_v36, %s6069_s10 }
 0x151   :  { %v658_v38 = vrot.slane %v646_v61, 7  ;;  %v694_v41 = vrot.slane %v646_v61, 1 }
 0x153   :  { %788 = vrot.lane.b32.xlu1 %v715_v40, %s6069_s10  ;;  %v6478_v42 = vsel %vm7450_vm10, %v658_v38, %v659_v62  ;;  %v6482_v45 = vsel %vm7454_vm12, %v657_v26, %v658_v38  ;;  %v709_v52 = vsel %vm7453_vm11, %v693_v32, %v694_v41  ;;  %v708_v53 = vsel %vm7455_vm13, %v694_v41, %v695_v49  ;;  %vm7456_vm12 = vmmov %vm7450_vm10 }
 0x154   :  { %v5738_v47 = vpop.f32.mrf.mxu0  ;;  %746 = vrot.lane.b32.xlu0 %v646_v61, %s6068_s8  ;;  %v717_v46 = vsel %vm6159_vm2, 0.0, %v709_v52  ;;  %vm7457_vm13 = vmmov %vm7453_vm11 }
 0x155   :  { %v649_v48 = vmax.f32 %v5738_v47, 0.0 }
 0x156   :  { %v613_v63 = vpop.f32.mrf.mxu0 }
 0x157   :  { %v648_v51 = vmax.f32 %v613_v63, 0.0  ;;  %752 = vrot.lane.b32.xlu1 %v649_v48, %s6068_s8  ;;  %v661_v1 = vrot.slane %v649_v48, 7  ;;  %v697_v14 = vrot.slane %v649_v48, 1 }
 0x158   :  { %794 = vrot.lane.b32.xlu0 %v708_v53, %s6069_s10 }
 0x159   :  { %v660_v54 = vrot.slane %v648_v51, 7  ;;  %v696_v55 = vrot.slane %v648_v51, 1 }
 0x15b   :  { %792 = vrot.lane.b32.xlu1 %v717_v46, %s6069_s10  ;;  %v6496_v56 = vsel %vm7450_vm10, %v660_v54, %v661_v1  ;;  %v6500_v50 = vsel %vm7456_vm12, %v659_v62, %v660_v54  ;;  %v707_v43 = vsel %vm7453_vm11, %v695_v49, %v696_v55  ;;  %v706_v6 = vsel %vm7457_vm13, %v696_v55, %v697_v14  ;;  %vm7458_vm10 = vmmov %vm7453_vm11 }
 0x15c   :  { %v5741_v58 = vpop.f32.mrf.mxu0  ;;  %750 = vrot.lane.b32.xlu0 %v648_v51, %s6068_s8  ;;  %v719_v17 = vsel %vm6199_vm5, 0.0, %v707_v43  ;;  %vm7459_vm11 = vmmov %vm7456_vm12  ;;  %v680_v55 = vsel %vm6333_vm14, 0.0, %v6464_v29  ;;  %v682_v29 = vsel %vm6355_vm15, 0.0, %v6482_v45  ;;  %v684_v45 = vsel %vm6372_vm4, 0.0, %v6500_v50 }
 0x15d   :  { %v651_v3 = vmax.f32 %v5741_v58, 0.0  ;;  %vm7460_vm13 = vmmov %vm7458_vm10 }
 0x15e   :  { %v623_v5 = vpop.f32.mrf.mxu0 }
 0x15f   :  { %v650_v15 = vmax.f32 %v623_v5, 0.0  ;;  %756 = vrot.lane.b32.xlu1 %v651_v3, %s6068_s8  ;;  %v663_v9 = vrot.slane %v651_v3, 7  ;;  %v699_v26 = vrot.slane %v651_v3, 1 }
 0x160   :  { %798 = vrot.lane.b32.xlu0 %v706_v6, %s6069_s10 }
 0x161   :  { %v662_v10 = vrot.slane %v650_v15, 7  ;;  %v698_v11 = vrot.slane %v650_v15, 1 }
 0x163   :  { %796 = vrot.lane.b32.xlu1 %v719_v17, %s6069_s10  ;;  %v705_v20 = vsel %vm7458_vm10, %v697_v14, %v698_v11  ;;  %v6516_v59 = vsel %vm7456_vm12, %v662_v10, %v663_v9  ;;  %v6520_v22 = vsel %vm7459_vm11, %v661_v1, %v662_v10  ;;  %v704_v32 = vsel %vm7460_vm13, %v698_v11, %v699_v26  ;;  %vm7461_vm10 = vmmov %vm7459_vm11 }
 0x164   :  { %v5744_v23 = vpop.f32.mrf.mxu0  ;;  %754 = vrot.lane.b32.xlu0 %v650_v15, %s6068_s8  ;;  %v721_v28 = vsel %vm6264_vm6, 0.0, %v705_v20  ;;  %vm7462_vm12 = vmmov %vm7460_vm13 }
 0x165   :  { %v653_v60 = vmax.f32 %v5744_v23, 0.0  ;;  %vm7463_vm11 = vmmov %vm7461_vm10 }
 0x166   :  { %v633_v27 = vpop.f32.mrf.mxu0  ;;  %vm7464_vm6 = vmmov %vm7461_vm10 }
 0x167   :  { %v665_v31 = vrot.slane %v653_v60, 7  ;;  %v652_v30 = vmax.f32 %v633_v27, 0.0  ;;  %800 = vrot.lane.b32.xlu1 %v721_v28, %s6069_s10  ;;  %v701_v41 = vrot.slane %v653_v60, 1  ;;  %vm7465_vm13 = vmmov %vm7462_vm12 }
 0x168   :  { %802 = vrot.lane.b32.xlu0 %v704_v32, %s6069_s10 }
 0x169   :  { %v664_v33 = vrot.slane %v652_v30, 7  ;;  %v700_v61 = vrot.slane %v652_v30, 1  ;;  %v677_v35 = vsel %vm7461_vm10, %v665_v31, %v654_v12  ;;  %vm834_vm10 = vcmask 130048  }
 0x16a   :  { %v678_v51 = vsel %vm6325_vm9, 0.0, %v677_v35 }
 0x16b   :  { %v703_v36 = vsel %vm7462_vm12, %v699_v26, %v700_v61  ;;  %v6537_v62 = vsel %vm7463_vm11, %v663_v9, %v664_v33  ;;  %v6541_v38 = vsel %vm7464_vm6, %v664_v33, %v665_v31  ;;  %v702_v12 = vsel %vm7465_vm13, %v700_v61, %v701_v41  ;;  %vm7466_vm6 = vmmov %vm7462_vm12 }
 0x16c   :  { %v723_v40 = vsel %vm6290_vm7, 0.0, %v703_v36  ;;  %758 = vrot.lane.b32.xlu0 %v652_v30, %s6068_s8  ;;  %v713_v47 = vsel %vm7466_vm6, %v701_v41, %v690_v13  ;;  %vm847_vm12 = vcmask 195584   ;;  %vm7467_vm11 = vcmask 64512  }
 0x16d   :  { %804 = vrot.lane.b32.xlu1 %v723_v40, %s6069_s10  ;;  %v725_v48 = vsel %vm6306_vm8, 0.0, %v713_v47  ;;  %vm7423_vm13 = vcmask 203776   ;;  %vm7468_vm6 = vmmov %vm7467_vm11 }
 0x16e   :  { %vm7472_vm4 = vmmov %vm7468_vm6 }
 0x170   :  { %806 = vrot.lane.b32.xlu0 %v702_v12, %s6069_s10 }
 0x171   :  { %760 = vrot.lane.b32.xlu1 %v653_v60, %s6068_s8 }
 0x175   :  { %808 = vrot.lane.b32.xlu1 %v725_v48, %s6069_s10 }
 0x1b4   :  { %v741_v49 = vpop.permute.xlu1 %740 }
 0x1b6   :  { %v739_v63 = vpop.permute.xlu0 %738 }
 0x1b7   :  { %v822_v52 = vsel %vm7467_vm11, %v678_v51, %v739_v63  ;;  %vm7469_vm11 = vmmov %vm7468_vm6 }
 0x1b8   :  { %v823_v14 = vsel %vm7469_vm11, %v6455_v24, %v741_v49  ;;  %vm7470_vm11 = vmmov %vm7468_vm6 }
 0x1b9   :  { %v745_v1 = vpop.permute.xlu1 %744 }
 0x1ba   :  { %v787_v53 = vpop.permute.xlu0 %786  ;;  %v825_v20 = vsel %vm7470_vm11, %v6460_v0, %v745_v1  ;;  %vm7471_vm11 = vmmov %vm7468_vm6 }
 0x1bb   :  { %v835_v7 = vsel %vm834_vm10, %v822_v52, %v787_v53 }
 0x1bc   :  { %v848_v13 = vsel %vm847_vm12, %v835_v7, 1.0 }
 0x1bd   :  { %5753 = vmatprep.mubr.msk.f32.mxu1 %vm7423_vm13, %v848_v13 }
 0x1be   :  { %v743_v54 = vpop.permute.xlu0 %742 }
 0x1bf   :  { %v824_v3 = vsel %vm7468_vm6, %v680_v55, %v743_v54  ;;  %v688_v54 = vsel %vm6401_vm0, 0.0, %v6537_v62 }
 0x1c1   :  { %v749_v46 = vpop.permute.xlu1 %748 }
 0x1c2   :  { %v791_v58 = vpop.permute.xlu0 %790  ;;  %v827_v33 = vsel %vm7471_vm11, %v6478_v42, %v749_v46  ;;  %v686_v42 = vsel %vm6390_vm3, 0.0, %v6520_v22  ;;  %vm7474_vm11 = vmmov %vm7472_vm4 }
 0x1c3   :  { %v837_v5 = vsel %vm834_vm10, %v824_v3, %v791_v58 }
 0x1c4   :  { %v850_v10 = vsel %vm847_vm12, %v837_v5, 1.0 }
 0x1c5   :  { %v789_v15 = vpop.permute.xlu1 %788 }
 0x1c6   :  { %v836_v43 = vsel %vm834_vm10, %v823_v14, %v789_v15  ;;  %v747_v9 = vpop.permute.xlu0 %746 }
 0x1c7   :  { %v849_v6 = vsel %vm847_vm12, %v836_v43, 1.0  ;;  %v826_v17 = vsel %vm7468_vm6, %v682_v29, %v747_v9  ;;  %v1249_v43 = vld [vmem:[%s7413_s3 + $0x18] sm:$0x1]  ;;  %v1247_v9 = vld [vmem:[%s7413_s3 + $0x8] sm:$0xff] }
 0x1c8   :  { %5754 = vmatmul.mubr.msk.f32.vlgmr.msra.gmra.mxu1 %vm7423_vm13, %v849_v6  ;;  %v1248_v6 = vld [vmem:[%s7413_s3 + $0x10] sm:$0xff] }
 0x1c9   :  { %v753_v11 = vpop.permute.xlu1 %752  ;;  %5756 = vmatprep.mubr.msk.f32.mxu1 %vm7423_vm13, %v850_v10 }
 0x1ca   :  { %v795_v24 = vpop.permute.xlu0 %794  ;;  %v829_v50 = vsel %vm7472_vm4, %v6496_v56, %v753_v11 }
 0x1cb   :  { %v839_v23 = vsel %vm834_vm10, %v826_v17, %v795_v24 }
 0x1cc   :  { %v852_v31 = vsel %vm847_vm12, %v839_v23, 1.0 }
 0x1cd   :  { %v793_v60 = vpop.permute.xlu1 %792 }
 0x1ce   :  { %v838_v26 = vsel %vm834_vm10, %v825_v20, %v793_v60  ;;  %v751_v28 = vpop.permute.xlu0 %750 }
 0x1cf   :  { %v851_v27 = vsel %vm847_vm12, %v838_v26, 1.0  ;;  %v828_v32 = vsel %vm7468_vm6, %v684_v45, %v751_v28  ;;  %vm7473_vm6 = vmmov %vm7472_vm4  ;;  %v1246_v28 = vld [vmem:[%s7413_s3] sm:$0xff] }
 0x1d0   :  { %5757 = vmatmul.mubr.msk.f32.gmra.mxu1 %vm7423_vm13, %v851_v27 }
 0x1d1   :  { %v757_v30 = vpop.permute.xlu1 %756  ;;  %5759 = vmatprep.mubr.msk.f32.mxu1 %vm7423_vm13, %v852_v31 }
 0x1d2   :  { %v799_v0 = vpop.permute.xlu0 %798  ;;  %v831_v53 = vsel %vm7472_vm4, %v6516_v59, %v757_v30 }
 0x1d3   :  { %v841_v61 = vsel %vm834_vm10, %v828_v32, %v799_v0 }
 0x1d4   :  { %v854_v12 = vsel %vm847_vm12, %v841_v61, 1.0 }
 0x1d5   :  { %v797_v35 = vpop.permute.xlu1 %796 }
 0x1d6   :  { %v840_v36 = vsel %vm834_vm10, %v827_v33, %v797_v35  ;;  %v755_v41 = vpop.permute.xlu0 %754 }
 0x1d7   :  { %v853_v40 = vsel %vm847_vm12, %v840_v36, 1.0  ;;  %v830_v49 = vsel %vm7473_vm6, %v686_v42, %v755_v41  ;;  %vm7475_vm6 = vmmov %vm7472_vm4  ;;  %vm7476_vm4 = vcmask 1040384  }
 0x1d8   :  { %5760 = vmatmul.mubr.msk.f32.gmra.mxu1 %vm7423_vm13, %v853_v40  ;;  %5771 = vmatprep.subr.msk.mxu0 %vm7476_vm4, %v1249_v43 }
 0x1d9   :  { %v801_v47 = vpop.permute.xlu1 %800  ;;  %5762 = vmatprep.mubr.msk.f32.mxu1 %vm7423_vm13, %v854_v12 }
 0x1da   :  { %v842_v48 = vsel %vm834_vm10, %v829_v50, %v801_v47  ;;  %v803_v51 = vpop.permute.xlu0 %802 }
 0x1db   :  { %v855_v63 = vsel %vm847_vm12, %v842_v48, 1.0  ;;  %v843_v52 = vsel %vm834_vm10, %v830_v49, %v803_v51 }
 0x1dc   :  { %5763 = vmatmul.mubr.msk.f32.gmra.mxu1 %vm7423_vm13, %v855_v63  ;;  %v856_v56 = vsel %vm847_vm12, %v843_v52, 1.0 }
 0x1dd   :  { %5765 = vmatprep.mubr.msk.f32.mxu1 %vm7423_vm13, %v856_v56 }
 0x1de   :  { %v759_v7 = vpop.permute.xlu0 %758 }
 0x1df   :  { %v805_v22 = vpop.permute.xlu1 %804  ;;  %v832_v46 = vsel %vm7474_vm11, %v688_v54, %v759_v7  ;;  %vm7477_vm11 = vmmov %vm7476_vm4  ;;  %vm7479_vm4 = vcmp.lt.s32.totalorder %v6139_v8, 1 }
 0x1e0   :  { %v844_v1 = vsel %vm834_vm10, %v831_v53, %v805_v22  ;;  %5772 = vmatpush3.msk.msra.mxu0 %vm7477_vm11, %v1249_v43 }
 0x1e1   :  { %v857_v13 = vsel %vm847_vm12, %v844_v1, 1.0  ;;  %5773 = vmatprep.subr.mxu0 %v1248_v6 }
 0x1e2   :  { %5766 = vmatmul.mubr.msk.f32.gmra.mxu1 %vm7423_vm13, %v857_v13  ;;  %v807_v58 = vpop.permute.xlu0 %806  ;;  %5774 = vmatpush3.msra.mxu0 %v1248_v6 }
 0x1e3   :  { %v761_v55 = vpop.permute.xlu1 %760  ;;  %v845_v3 = vsel %vm834_vm10, %v832_v46, %v807_v58  ;;  %5775 = vmatprep.subr.mxu0 %v1247_v9 }
 0x1e4   :  { %v858_v59 = vsel %vm847_vm12, %v845_v3, 1.0  ;;  %v833_v14 = vsel %vm7475_vm6, %v6541_v38, %v761_v55  ;;  %5776 = vmatpush3.msra.mxu0 %v1247_v9  ;;  %vm7478_vm6 = vcmp.lt.s32.totalorder %v6139_v8, 7 }
 0x1e5   :  { %5768 = vmatprep.mubr.msk.f32.mxu1 %vm7423_vm13, %v858_v59  ;;  %5777 = vmatprep.subr.mxu0 %v1246_v28  ;;  %vm7480_vm11 = vmmov %vm7478_vm6 }
 0x1e6   :  { %5778 = vmatpush3.msra.mxu0 %v1246_v28 }
 0x1e7   :  { %v809_v5 = vpop.permute.xlu1 %808 }
 0x1e8   :  { %v846_v15 = vsel %vm834_vm10, %v833_v14, %v809_v5 }
 0x1e9   :  { %v859_v62 = vsel %vm847_vm12, %v846_v15, 1.0 }
 0x1ea   :  { %5769 = vmatmul.mubr.msk.f32.gmra.mxu1 %vm7423_vm13, %v859_v62  ;;  %vm7482_vm13 = vmmov %vm7480_vm11 }
 0x288   :  { %v5755_v38 = vpop.f32.mrf.mxu1 }
 0x289   :  { %v1031_v10 = vmax.f32 %v5755_v38, 0.0 }
 0x28a   :  { %v971_v11 = vpop.f32.mrf.mxu1 }
 0x28b   :  { %v6640_v29 = vmax.f32 %v971_v11, 0.0  ;;  %1128 = vrot.lane.b32.xlu1 %v1031_v10, %s6068_s8  ;;  %v1043_v24 = vrot.slane %v1031_v10, 7  ;;  %v1079_v17 = vrot.slane %v1031_v10, 1 }
 0x28d   :  { %v1042_v20 = vrot.slane %v6640_v29, 7  ;;  %v1078_v23 = vrot.slane %v6640_v29, 1  ;;  %1126 = vrot.lane.b32.xlu0 %v6640_v29, %s6068_s8 }
 0x28f   :  { %v1100_v60 = vsel %vm7478_vm6, %v1078_v23, %v1079_v17  ;;  %v6655_v26 = vsel %vm7479_vm4, %v1042_v20, %v1043_v24  ;;  %vm7481_vm6 = vmmov %vm7479_vm4 }
 0x290   :  { %v5758_v27 = vpop.f32.mrf.mxu1 }
 0x291   :  { %v1033_v31 = vmax.f32 %v5758_v27, 0.0  ;;  %1174 = vrot.lane.b32.xlu0 %v1100_v60, %s6069_s10 }
 0x292   :  { %v981_v30 = vpop.f32.mrf.mxu1 }
 0x293   :  { %v1032_v45 = vmax.f32 %v981_v30, 0.0  ;;  %1132 = vrot.lane.b32.xlu1 %v1033_v31, %s6068_s8  ;;  %v1045_v0 = vrot.slane %v1033_v31, 7  ;;  %v1081_v32 = vrot.slane %v1033_v31, 1 }
 0x295   :  { %v1044_v33 = vrot.slane %v1032_v45, 7  ;;  %v1080_v61 = vrot.slane %v1032_v45, 1  ;;  %1130 = vrot.lane.b32.xlu0 %v1032_v45, %s6068_s8 }
 0x297   :  { %v1098_v35 = vsel %vm7480_vm11, %v1080_v61, %v1081_v32  ;;  %v6667_v36 = vsel %vm7481_vm6, %v1044_v33, %v1045_v0  ;;  %v6671_v40 = vsel %vm7479_vm4, %v1043_v24, %v1044_v33  ;;  %v1099_v42 = vsel %vm7482_vm13, %v1079_v17, %v1080_v61  ;;  %vm7483_vm13 = vmmov %vm7479_vm4 }
 0x298   :  { %v5761_v41 = vpop.f32.mrf.mxu1  ;;  %v1103_v7 = vsel %vm6155_vm1, 0.0, %v1099_v42  ;;  %vm7484_vm6 = vmmov %vm7479_vm4 }
 0x299   :  { %v1035_v12 = vmax.f32 %v5761_v41, 0.0  ;;  %1178 = vrot.lane.b32.xlu0 %v1098_v35, %s6069_s10  ;;  %vm7485_vm1 = vmmov %vm7480_vm11 }
 0x29a   :  { %v991_v50 = vpop.f32.mrf.mxu1 }
 0x29b   :  { %v1034_v47 = vmax.f32 %v991_v50, 0.0  ;;  %1136 = vrot.lane.b32.xlu1 %v1035_v12, %s6068_s8  ;;  %v1083_v49 = vrot.slane %v1035_v12, 1  ;;  %v1047_v56 = vrot.slane %v1035_v12, 7 }
 0x29c   :  { %v5764_v48 = vpop.f32.mrf.mxu1 }
 0x29d   :  { %v1046_v63 = vrot.slane %v1034_v47, 7  ;;  %v1082_v51 = vrot.slane %v1034_v47, 1  ;;  %v1037_v52 = vmax.f32 %v5764_v48, 0.0  ;;  %1134 = vrot.lane.b32.xlu0 %v1034_v47, %s6068_s8 }
 0x29e   :  { %v1001_v53 = vpop.f32.mrf.mxu1 }
 0x29f   :  { %v1036_v22 = vmax.f32 %v1001_v53, 0.0  ;;  %1176 = vrot.lane.b32.xlu1 %v1103_v7, %s6069_s10  ;;  %v1096_v1 = vsel %vm7480_vm11, %v1082_v51, %v1083_v49  ;;  %v6685_v13 = vsel %vm7483_vm13, %v1046_v63, %v1047_v56  ;;  %v6689_v54 = vsel %vm7484_vm6, %v1045_v0, %v1046_v63  ;;  %vm7486_vm11 = vmmov %vm7479_vm4 }
 0x2a0   :  { %v1049_v46 = vrot.slane %v1037_v52, 7  ;;  %v1097_v59 = vsel %vm7485_vm1, %v1081_v32, %v1082_v51  ;;  %v1085_v43 = vrot.slane %v1037_v52, 1  ;;  %vm7487_vm13 = vmmov %vm7485_vm1 }
 0x2a1   :  { %v1048_v55 = vrot.slane %v1036_v22, 7  ;;  %1182 = vrot.lane.b32.xlu0 %v1096_v1, %s6069_s10  ;;  %v1084_v58 = vrot.slane %v1036_v22, 1  ;;  %v1105_v6 = vsel %vm6159_vm2, 0.0, %v1097_v59  ;;  %vm7488_vm6 = vmmov %vm7485_vm1  ;;  %v1068_v1 = vsel %vm6333_vm14, 0.0, %v6671_v40 }
 0x2a2   :  { %v5767_v18 = vpop.f32.mrf.mxu1  ;;  %vm7489_vm1 = vmmov %vm7479_vm4  ;;  %v1070_v40 = vsel %vm6355_vm15, 0.0, %v6689_v54 }
 0x2a3   :  { %v1039_v3 = vmax.f32 %v5767_v18, 0.0  ;;  %1140 = vrot.lane.b32.xlu1 %v1037_v52, %s6068_s8  ;;  %v6697_v14 = vsel %vm7479_vm4, %v1048_v55, %v1049_v46  ;;  %v6701_v15 = vsel %vm7486_vm11, %v1047_v56, %v1048_v55  ;;  %v1095_v11 = vsel %vm7487_vm13, %v1083_v49, %v1084_v58  ;;  %vm7490_vm4 = vmmov %vm7489_vm1 }
 0x2a4   :  { %v1011_v5 = vpop.f32.mrf.mxu1  ;;  %v1094_v24 = vsel %vm7488_vm6, %v1084_v58, %v1085_v43  ;;  %v1107_v27 = vsel %vm6199_vm5, 0.0, %v1095_v11  ;;  %vm7491_vm2 = vmmov %vm7488_vm6  ;;  %vm7492_vm11 = vnez %v7431_v2 }
 0x2a5   :  { %v1038_v62 = vmax.f32 %v1011_v5, 0.0  ;;  %1138 = vrot.lane.b32.xlu0 %v1036_v22, %s6068_s8  ;;  %v1051_v38 = vrot.slane %v1039_v3, 7  ;;  %v1087_v32 = vrot.slane %v1039_v3, 1  ;;  %vm7493_vm5 = vmmov %vm7489_vm1 }
 0x2a6   :  { %vm7494_vm13 = vmmov %vm7491_vm2 }
 0x2a7   :  { %v1050_v9 = vrot.slane %v1038_v62, 7  ;;  %v1086_v10 = vrot.slane %v1038_v62, 1  ;;  %1180 = vrot.lane.b32.xlu1 %v1105_v6, %s6069_s10  ;;  %vm7495_vm6 = vmmov %vm7489_vm1 }
 0x2a9   :  { %1186 = vrot.lane.b32.xlu0 %v1094_v24, %s6069_s10  ;;  %v6714_v17 = vsel %vm7489_vm1, %v1049_v46, %v1050_v9  ;;  %v6718_v19 = vsel %vm7490_vm4, %v1050_v9, %v1051_v38  ;;  %v1093_v31 = vsel %vm7491_vm2, %v1085_v43, %v1086_v10  ;;  %v1092_v41 = vsel %vm7494_vm13, %v1086_v10, %v1087_v32  ;;  %vm7496_vm4 = vmmov %vm7491_vm2 }
 0x2aa   :  { %v5770_v60 = vpop.f32.mrf.mxu1  ;;  %v1109_v33 = vsel %vm7492_vm11, 0.0, %v1093_v31  ;;  %vm7497_vm11 = vmmov %vm7491_vm2 }
 0x2ab   :  { %v1041_v28 = vmax.f32 %v5770_v60, 0.0  ;;  %1184 = vrot.lane.b32.xlu1 %v1107_v27, %s6069_s10 }
 0x2ac   :  { %v1021_v30 = vpop.f32.mrf.mxu1 }
 0x2ad   :  { %v1053_v45 = vrot.slane %v1041_v28, 7  ;;  %v1040_v0 = vmax.f32 %v1021_v30, 0.0  ;;  %1142 = vrot.lane.b32.xlu0 %v1038_v62, %s6068_s8 }
 0x2af   :  { %v1052_v61 = vrot.slane %v1040_v0, 7  ;;  %v1088_v35 = vrot.slane %v1040_v0, 1  ;;  %1188 = vrot.lane.b32.xlu1 %v1109_v33, %s6069_s10  ;;  %v1065_v39 = vsel %vm7493_vm5, %v1053_v45, %v1042_v20  ;;  %v1089_v20 = vrot.slane %v1041_v28, 1 }
 0x2b0   :  { %v1066_v63 = vsel %vm6325_vm9, 0.0, %v1065_v39  ;;  %vm7499_vm5 = vcmask 203776  }
 0x2b1   :  { %1190 = vrot.lane.b32.xlu0 %v1092_v41, %s6069_s10  ;;  %v6738_v12 = vsel %vm7495_vm6, %v1051_v38, %v1052_v61  ;;  %v6742_v2 = vsel %vm7489_vm1, %v1052_v61, %v1053_v45  ;;  %v1091_v50 = vsel %vm7496_vm4, %v1087_v32, %v1088_v35  ;;  %v1090_v42 = vsel %vm7491_vm2, %v1088_v35, %v1089_v20  ;;  %vm7502_vm13 = vmmov %vm7499_vm5 }
 0x2b2   :  { %v1111_v47 = vsel %vm6290_vm7, 0.0, %v1091_v50  ;;  %v1101_v48 = vsel %vm7497_vm11, %v1089_v20, %v1078_v23  ;;  %vm7498_vm7 = vcmask 64512   ;;  %vm7503_vm14 = vmmov %vm7499_vm5  ;;  %vm7506_vm4 = vnez %v7443_v21 }
 0x2b3   :  { %1144 = vrot.lane.b32.xlu1 %v1039_v3, %s6068_s8  ;;  %v1113_v49 = vsel %vm6306_vm8, 0.0, %v1101_v48  ;;  %vm7500_vm8 = vmmov %vm7498_vm7  ;;  %v1072_v11 = vsel %vm7506_vm4, 0.0, %v6701_v15  ;;  %v1076_v20 = vsel %vm6401_vm0, 0.0, %v6738_v12 }
 0x2b4   :  { %vm7501_vm9 = vmmov %vm7498_vm7 }
 0x2b5   :  { %1146 = vrot.lane.b32.xlu0 %v1040_v0, %s6068_s8  ;;  %vm7504_vm6 = vmmov %vm7498_vm7 }
 0x2b6   :  { %vm7505_vm1 = vmmov %vm7504_vm6 }
 0x2b7   :  { %1192 = vrot.lane.b32.xlu1 %v1111_v47, %s6069_s10  ;;  %vm7507_vm15 = vmmov %vm7505_vm1 }
 0x2b8   :  { %vm7508_vm2 = vmmov %vm7499_vm5 }
 0x2b9   :  { %1194 = vrot.lane.b32.xlu0 %v1090_v42, %s6069_s10  ;;  %vm7509_vm11 = vmmov %vm7505_vm1 }
 0x2ba   :  { %vm7518_vm4 = vmmov %vm7508_vm2 }
 0x2bb   :  { %1148 = vrot.lane.b32.xlu1 %v1041_v28, %s6068_s8  ;;  %vm7521_vm0 = vmmov %vm7518_vm4 }
 0x2bf   :  { %1196 = vrot.lane.b32.xlu1 %v1113_v49, %s6069_s10 }
 0x2fd   :  { %v1129_v53 = vpop.permute.xlu1 %1128 }
 0x2fe   :  { %v1211_v55 = vsel %vm7501_vm9, %v6655_v26, %v1129_v53  ;;  %vm7513_vm9 = vmmov %vm7508_vm2  ;;  %v1822_v53 = vld [vmem:[%s7414_s4] sm:$0xff] }
 0x2ff   :  { %v1127_v16 = vpop.permute.xlu0 %1126 }
 0x300   :  { %v1210_v51 = vsel %vm7498_vm7, %v1066_v63, %v1127_v16  ;;  %vm7510_vm7 = vmmov %vm7508_vm2 }
 0x303   :  { %v1175_v52 = vpop.permute.xlu0 %1174 }
 0x304   :  { %v1222_v56 = vsel %vm834_vm10, %v1210_v51, %v1175_v52 }
 0x305   :  { %v1234_v29 = vsel %vm847_vm12, %v1222_v56, 1.0  ;;  %v1133_v7 = vpop.permute.xlu1 %1132  ;;  %v6070_v56 = vmov 0.0  }
 0x306   :  { %5779 = vmatprep.mubr.msk.f32.mxu0 %vm7499_vm5, %v1234_v29  ;;  %v1213_v6 = vsel %vm7505_vm1, %v6667_v36, %v1133_v7  ;;  %vm7511_vm5 = vmmov %vm7508_vm2  ;;  %5797 = vmatprep.subr.mxu1 %v6070_v56 }
 0x307   :  { %v1131_v23 = vpop.permute.xlu0 %1130  ;;  %5822 = vmatprep.subr.mxu0 %v6070_v56  ;;  %5798 = vmatpush3.msra.mxu1 %v1822_v53 }
 0x308   :  { %v1212_v46 = vsel %vm7500_vm8, %v1068_v1, %v1131_v23  ;;  %vm7512_vm8 = vmmov %vm7505_vm1  ;;  %5802 = vmatprep.subr.mxu1 %v6070_v56  ;;  %v6072_v23 = vmov 1983009808  }
 0x309   :  { %v1428_v7 = vunpack.c.l.s4 %v6072_v23  ;;  %v1831_v23 = vld [vmem:[%s7414_s4 + $0x48] sm:$0xff] }
 0x30b   :  { %v1179_v25 = vpop.permute.xlu0 %1178  ;;  %v1429_v1 = vunpack.c.0.s8 %v1428_v7 }
 0x30c   :  { %v1224_v18 = vsel %vm834_vm10, %v1212_v46, %v1179_v25 }
 0x30d   :  { %v1137_v22 = vpop.permute.xlu1 %1136  ;;  %v1236_v62 = vsel %vm847_vm12, %v1224_v18, 1.0 }
 0x30e   :  { %v1215_v36 = vsel %vm7509_vm11, %v6685_v13, %v1137_v22  ;;  %v1074_v13 = vsel %vm6390_vm3, 0.0, %v6714_v17  ;;  %vm7517_vm3 = vmmov %vm7505_vm1  ;;  %vm6071_vm11 = vmmov 0  }
 0x30f   :  { %v1135_v4 = vpop.permute.xlu0 %1134  ;;  %5799 = vmatprep.mubr.msk.f32.mxu1 %vm6071_vm11, %v6070_v56 }
 0x310   :  { %v1214_v43 = vsel %vm7504_vm6, %v1070_v40, %v1135_v4  ;;  %vm7516_vm6 = vmmov %vm7508_vm2  ;;  %v6073_v40 = vmov 1934713408  }
 0x311   :  { %v1177_v58 = vpop.permute.xlu1 %1176 }
 0x312   :  { %v1223_v3 = vsel %vm834_vm10, %v1211_v55, %v1177_v58  ;;  %v6852_v55 = vsub.s32 %v1429_v1, %v6139_v8 }
 0x313   :  { %v1235_v59 = vsel %vm847_vm12, %v1223_v3, 1.0  ;;  %v1183_v5 = vpop.permute.xlu0 %1182 }
 0x314   :  { %5780 = vmatmul.mubr.msk.f32.vlgmr.msra.gmra.mxu0 %vm7502_vm13, %v1235_v59  ;;  %v1226_v38 = vsel %vm834_vm10, %v1214_v43, %v1183_v5  ;;  %vm7514_vm13 = vmmov %vm7505_vm1 }
 0x315   :  { %v1141_v37 = vpop.permute.xlu1 %1140  ;;  %5782 = vmatprep.mubr.msk.f32.mxu0 %vm7503_vm14, %v1236_v62  ;;  %v1238_v57 = vsel %vm847_vm12, %v1226_v38, 1.0  ;;  %vm7515_vm14 = vmmov %vm7508_vm2 }
 0x316   :  { %v1217_v45 = vsel %vm7512_vm8, %v6697_v14, %v1141_v37  ;;  %vm7526_vm8 = vmmov %vm7505_vm1 }
 0x317   :  { %v1139_v26 = vpop.permute.xlu0 %1138 }
 0x318   :  { %v1216_v54 = vsel %vm7507_vm15, %v1072_v11, %v1139_v26  ;;  %vm7519_vm15 = vmmov %vm7508_vm2  ;;  %v1459_v26 = vunpack.c.l.s4 %v6073_v40 }
 0x319   :  { %v1181_v9 = vpop.permute.xlu1 %1180 }
 0x31a   :  { %v1225_v10 = vsel %vm834_vm10, %v1213_v6, %v1181_v9 }
 0x31b   :  { %v1237_v24 = vsel %vm847_vm12, %v1225_v10, 1.0  ;;  %v1187_v60 = vpop.permute.xlu0 %1186 }
 0x31c   :  { %5783 = vmatmul.mubr.msk.f32.gmra.mxu0 %vm7508_vm2, %v1237_v24  ;;  %v1228_v27 = vsel %vm834_vm10, %v1216_v54, %v1187_v60  ;;  %vm7520_vm2 = vmmov %vm7505_vm1  ;;  %v1460_v60 = vunpack.c.0.s8 %v1459_v26 }
 0x31d   :  { %v1185_v28 = vpop.permute.xlu1 %1184  ;;  %5785 = vmatprep.mubr.msk.f32.mxu0 %vm7510_vm7, %v1238_v57  ;;  %v1240_v30 = vsel %vm847_vm12, %v1228_v27, 1.0  ;;  %vm7524_vm7 = vmmov %vm7505_vm1 }
 0x31e   :  { %v1227_v21 = vsel %vm834_vm10, %v1215_v36, %v1185_v28  ;;  %v6874_v28 = vsub.s32 %v1460_v60, %v6139_v8 }
 0x31f   :  { %v1239_v15 = vsel %vm847_vm12, %v1227_v21, 1.0  ;;  %v1143_v31 = vpop.permute.xlu0 %1142 }
 0x320   :  { %5786 = vmatmul.mubr.msk.f32.gmra.mxu0 %vm7511_vm5, %v1239_v15  ;;  %v1218_v33 = vsel %vm7514_vm13, %v1074_v13, %v1143_v31  ;;  %v1823_v13 = vld [vmem:[%s7414_s4 + $0x8] sm:$0xff]  ;;  %vm7525_vm5 = vmmov %vm7505_vm1 }
 0x321   :  { %v1189_v0 = vpop.permute.xlu1 %1188  ;;  %5788 = vmatprep.mubr.msk.f32.mxu0 %vm7513_vm9, %v1240_v30  ;;  %vm7527_vm9 = vmmov %vm7505_vm1 }
 0x322   :  { %v1229_v32 = vsel %vm834_vm10, %v1217_v45, %v1189_v0  ;;  %vm7528_vm13 = vmmov %vm7505_vm1 }
 0x323   :  { %v1241_v61 = vsel %vm847_vm12, %v1229_v32, 1.0  ;;  %v1191_v35 = vpop.permute.xlu0 %1190 }
 0x324   :  { %v1230_v39 = vsel %vm834_vm10, %v1218_v33, %v1191_v35  ;;  %5789 = vmatmul.mubr.msk.f32.gmra.mxu0 %vm7515_vm14, %v1241_v61  ;;  %vm7529_vm14 = vmmov %vm7505_vm1 }
 0x325   :  { %v1242_v14 = vsel %vm847_vm12, %v1230_v39, 1.0  ;;  %v1145_v41 = vpop.permute.xlu1 %1144 }
 0x326   :  { %5791 = vmatprep.mubr.msk.f32.mxu0 %vm7516_vm6, %v1242_v14  ;;  %v1219_v34 = vsel %vm7505_vm1, %v6718_v19, %v1145_v41  ;;  %v1824_v41 = vld [vmem:[%s7414_s4 + $0x10] sm:$0xff]  ;;  %vm7530_vm6 = vmmov %vm7505_vm1 }
 0x327   :  { %v1147_v50 = vpop.permute.xlu0 %1146 }
 0x328   :  { %v1220_v42 = vsel %vm7517_vm3, %v1076_v20, %v1147_v50  ;;  %vm7531_vm3 = vmmov %vm7505_vm1 }
 0x329   :  { %v1193_v17 = vpop.permute.xlu1 %1192 }
 0x32a   :  { %v1231_v47 = vsel %vm834_vm10, %v1219_v34, %v1193_v17 }
 0x32b   :  { %v1243_v48 = vsel %vm847_vm12, %v1231_v47, 1.0  ;;  %v1195_v49 = vpop.permute.xlu0 %1194 }
 0x32c   :  { %v1232_v16 = vsel %vm834_vm10, %v1220_v42, %v1195_v49  ;;  %5792 = vmatmul.mubr.msk.f32.gmra.mxu0 %vm7518_vm4, %v1243_v48  ;;  %v1829_v42 = vld [vmem:[%s7414_s4 + $0x38] sm:$0xff]  ;;  %vm7532_vm4 = vmmov %vm7505_vm1 }
 0x32d   :  { %v1244_v63 = vsel %vm847_vm12, %v1232_v16, 1.0  ;;  %v1149_v51 = vpop.permute.xlu1 %1148 }
 0x32e   :  { %5794 = vmatprep.mubr.msk.f32.mxu0 %vm7519_vm15, %v1244_v63  ;;  %v1221_v44 = vsel %vm7520_vm2, %v6742_v2, %v1149_v51  ;;  %v1827_v2 = vld [vmem:[%s7414_s4 + $0x28] sm:$0xff]  ;;  %v1825_v51 = vld [vmem:[%s7414_s4 + $0x18] sm:$0xff]  ;;  %vm7533_vm15 = vmmov %vm7505_vm1 }
 0x32f   :  { %5823 = vmatpush3.msra.mxu0 %v1827_v2  ;;  %vm7534_vm2 = vmmov %vm7505_vm1 }
 0x330   :  { %5832 = vmatprep.subr.mxu0 %v6070_v56 }
 0x331   :  { %v1197_v19 = vpop.permute.xlu1 %1196 }
 0x332   :  { %v1233_v12 = vsel %vm834_vm10, %v1221_v44, %v1197_v19  ;;  %vm7522_vm10 = vmmov %vm7505_vm1 }
 0x333   :  { %v1245_v52 = vsel %vm847_vm12, %v1233_v12, 1.0  ;;  %vm7523_vm12 = vmmov %vm7505_vm1 }
 0x334   :  { %5795 = vmatmul.mubr.msk.f32.gmra.mxu0 %vm7521_vm0, %v1245_v52  ;;  %vm7535_vm0 = vmmov %vm7505_vm1 }
 0x335   :  { %5824 = vmatprep.mubr.msk.f32.mxu0 %vm6071_vm11, %v6070_v56 }
 0x3d4   :  { %v5781_v29 = vpop.f32.mrf.mxu0 }
 0x3d5   :  { %v1415_v32 = vmax.f32 %v5781_v29, 0.0 }
 0x3d6   :  { %v1355_v25 = vpop.f32.mrf.mxu0 }
 0x3d7   :  { %v1414_v62 = vmax.f32 %v1355_v25, 0.0  ;;  %v1499_v34 = vrot.slane %v1415_v32, %v6852_v55  ;;  %v1492_v48 = vcombine.high %v1415_v32, %v6070_v56 }
 0x3d9   :  { %v1426_v24 = vcombine.high %v1414_v62, %v6070_v56  ;;  %v1433_v54 = vrot.slane %v1414_v62, %v6852_v55  ;;  %v1506_v2 = vrot.slane %v1492_v48, %v6852_v55 }
 0x3db   :  { %v1440_v27 = vrot.slane %v1426_v24, %v6852_v55 }
 0x3dc   :  { %v6847_v22 = vpop.f32.mrf.mxu0 }
 0x3de   :  { %v6849_v4 = vpop.f32.mrf.mxu0 }
 0x3e0   :  { %v5787_v46 = vpop.f32.mrf.mxu0 }
 0x3e1   :  { %v1419_v18 = vmax.f32 %v5787_v46, 0.0 }
 0x3e2   :  { %v1375_v58 = vpop.f32.mrf.mxu0 }
 0x3e3   :  { %v1756_v3 = vcombine.high %v1419_v18, %v6070_v56  ;;  %v6856_v59 = vrot.slane %v1419_v18, %v6852_v55  ;;  %v1418_v5 = vmax.f32 %v1375_v58, 0.0 }
 0x3e4   :  { %v5790_v37 = vpop.f32.mrf.mxu0 }
 0x3e5   :  { %v6859_v43 = vrot.slane %v1756_v3, %v6852_v55  ;;  %v1690_v6 = vcombine.high %v1418_v5, %v6070_v56  ;;  %v6863_v38 = vrot.slane %v1418_v5, %v6852_v55  ;;  %v1421_v31 = vmax.f32 %v5790_v37, 0.0  ;;  %v1826_v5 = vld [vmem:[%s7414_s4 + $0x20] sm:$0xff] }
 0x3e6   :  { %v1385_v9 = vpop.f32.mrf.mxu0 }
 0x3e7   :  { %v6866_v10 = vrot.slane %v1690_v6, %v6852_v55  ;;  %v1420_v11 = vmax.f32 %v1385_v9, 0.0  ;;  %v1514_v8 = vrot.slane %v1421_v31, %v6852_v55  ;;  %v1507_v17 = vcombine.high %v1421_v31, %v6070_v56 }
 0x3e8   :  { %v1416_v31 = vmax.f32 %v6849_v4, 0.0  ;;  %v1828_v4 = vld [vmem:[%s7414_s4 + $0x30] sm:$0xff] }
 0x3e9   :  { %v1441_v57 = vcombine.high %v1420_v11, %v6070_v56  ;;  %v1448_v36 = vrot.slane %v1420_v11, %v6852_v55  ;;  %v1522_v49 = vcombine.low %v1499_v34, %v1514_v8  ;;  %v6918_v44 = vrot.slane %v1507_v17, %v6852_v55  ;;  %v1837_v17 = vld [vmem:[%s7414_s4 + $0x78] sm:$0xff] }
 0x3ea   :  { %v1523_v19 = vcombine.high %v1499_v34, %v1514_v8 }
 0x3eb   :  { %v1455_v21 = vrot.slane %v1441_v57, %v6852_v55  ;;  %v1456_v15 = vcombine.low %v1433_v54, %v1448_v36  ;;  %v1457_v50 = vcombine.high %v1433_v54, %v1448_v36  ;;  %v6927_v29 = vrot.slane %v1522_v49, %v6874_v28 }
 0x3ec   :  { %v6878_v0 = vpop.f32.mrf.mxu0  ;;  %v6939_v18 = vrot.slane %v1523_v19, %v6874_v28  ;;  %v1538_v58 = vcombine.low %v1506_v2, %v6918_v44  ;;  %v1834_v19 = vld [vmem:[%s7414_s4 + $0x60] sm:$0xff] }
 0x3ed   :  { %v1464_v30 = vrot.slane %v1456_v15, %v6874_v28  ;;  %v1472_v45 = vcombine.low %v1440_v27, %v1455_v21  ;;  %v1473_v33 = vcombine.high %v1440_v27, %v1455_v21  ;;  %v1471_v63 = vrot.slane %v1457_v50, %v6874_v28  ;;  %v1833_v15 = vld [vmem:[%s7414_s4 + $0x58] sm:$0xff] }
 0x3ee   :  { %v6891_v14 = vpop.f32.mrf.mxu0  ;;  %v1554_v6 = vcombine.high %v6927_v29, %v6070_v56  ;;  %v7002_v32 = vrot.slane %v1538_v58, %v6874_v28  ;;  %v1838_v58 = vld [vmem:[%s7414_s4 + $0x80] sm:$0xff] }
 0x3ef   :  { %v6884_v61 = vrot.slane %v1472_v45, %v6874_v28  ;;  %5800 = vmatmul.mubr.msk.f32.vlgmr.msra.gmra.mxu1 %vm7522_vm10, %v1464_v30  ;;  %v1488_v35 = vcombine.high %v1464_v30, %v6070_v56  ;;  %v6902_v20 = vrot.slane %v1473_v33, %v6874_v28  ;;  %v1489_v3 = vcombine.high %v1471_v63, %v6070_v56  ;;  %vm7536_vm10 = vmmov %vm7535_vm0 }
 0x3f0   :  { %5803 = vmatpush3.msra.mxu1 %v1823_v13  ;;  %5804 = vmatprep.mubr.msk.f32.mxu1 %vm6071_vm11, %v6070_v56  ;;  %v1422_v9 = vmax.f32 %v6891_v14, 0.0  ;;  %v1539_v45 = vcombine.high %v1506_v2, %v6918_v44  ;;  %v1555_v33 = vcombine.high %v6939_v18, %v6070_v56  ;;  %v1423_v44 = vmax.f32 %v6878_v0, 0.0  ;;  %v1841_v0 = vld [vmem:[%s7414_s4 + $0x98] sm:$0xff] }
 0x3f1   :  { %v1490_v39 = vcombine.high %v6884_v61, %v6070_v56  ;;  %5807 = vmatprep.subr.mxu1 %v6070_v56  ;;  %v1491_v12 = vcombine.high %v6902_v20, %v6070_v56  ;;  %v1417_v2 = vmax.f32 %v6847_v22, 0.0 }
 0x3f2   :  { %v1580_v8 = vrot.slane %v1422_v9, %v6852_v55  ;;  %v7018_v14 = vrot.slane %v1539_v45, %v6874_v28  ;;  %v1573_v50 = vcombine.high %v1422_v9, %v6070_v56  ;;  %v1844_v45 = vld [vmem:[%s7414_s4 + $0xb0] sm:$0xff] }
 0x3f3   :  { %5805 = vmatmul.mubr.msk.f32.vlgmr.msra.gmra.mxu1 %vm7523_vm12, %v1488_v35  ;;  %5825 = vmatmul.mubr.msk.f32.vlgmr.msra.gmra.mxu0 %vm7524_vm7, %v1490_v39  ;;  %v1835_v35 = vld [vmem:[%s7414_s4 + $0x68] sm:$0xff]  ;;  %v1565_v39 = vrot.slane %v1416_v31, %v6852_v55  ;;  %vm7537_vm12 = vmmov %vm7535_vm0 }
 0x3f4   :  { %v5796_v47 = vpop.f32.mrf.mxu0  ;;  %5808 = vmatpush3.msra.mxu1 %v1824_v41  ;;  %5809 = vmatprep.mubr.msk.f32.mxu1 %vm6071_vm11, %v6070_v56  ;;  %v1556_v41 = vcombine.high %v7002_v32, %v6070_v56  ;;  %v1587_v48 = vrot.slane %v1573_v50, %v6852_v55  ;;  %vm7538_vm7 = vmmov %vm7535_vm0  ;;  %v1855_v50 = vld [vmem:[%s7414_s4 + $0x108] sm:$0xff] }
 0x3f5   :  { %5812 = vmatprep.subr.mxu1 %v6070_v56  ;;  %5833 = vmatpush3.msra.mxu0 %v1829_v42  ;;  %v1425_v52 = vmax.f32 %v5796_v47, 0.0  ;;  %v1588_v34 = vcombine.low %v1565_v39, %v1580_v8  ;;  %v1558_v47 = vcombine.high %v1416_v31, %v6070_v56  ;;  %v1557_v42 = vcombine.high %v7018_v14, %v6070_v56 }
 0x3f6   :  { %v1405_v16 = vpop.f32.mrf.mxu0  ;;  %5834 = vmatprep.mubr.msk.f32.mxu0 %vm6071_vm11, %v6070_v56  ;;  %5842 = vmatprep.subr.mxu0 %v6070_v56  ;;  %v1589_v49 = vcombine.high %v1565_v39, %v1580_v8  ;;  %v1851_v8 = vld [vmem:[%s7414_s4 + $0xe8] sm:$0xff] }
 0x3f7   :  { %v1424_v53 = vmax.f32 %v1405_v16, 0.0  ;;  %5810 = vmatmul.mubr.msk.f32.vlgmr.msra.gmra.mxu1 %vm7525_vm5, %v1471_v63  ;;  %5835 = vmatmul.mubr.msk.f32.vlgmr.msra.gmra.mxu0 %vm7526_vm8, %v1491_v12  ;;  %v1771_v7 = vcombine.high %v1425_v52, %v6070_v56  ;;  %v1778_v25 = vrot.slane %v1425_v52, %v6852_v55  ;;  %v7049_v16 = vrot.slane %v1588_v34, %v6874_v28  ;;  %v1839_v63 = vld [vmem:[%s7414_s4 + $0x88] sm:$0xff]  ;;  %vm7539_vm5 = vmmov %vm7535_vm0  ;;  %v1850_v34 = vld [vmem:[%s7414_s4 + $0xe0] sm:$0xff] }
 0x3f8   :  { %5813 = vmatpush3.msra.mxu1 %v1825_v51  ;;  %5814 = vmatprep.mubr.msk.f32.mxu1 %vm6071_vm11, %v6070_v56  ;;  %v1572_v51 = vrot.slane %v1558_v47, %v6852_v55  ;;  %v7069_v12 = vrot.slane %v1589_v49, %v6874_v28  ;;  %vm7540_vm8 = vmmov %vm7535_vm0  ;;  %v1857_v47 = vld [vmem:[%s7414_s4 + $0x118] sm:$0xff]  ;;  %v1854_v49 = vld [vmem:[%s7414_s4 + $0x100] sm:$0xff] }
 0x3f9   :  { %v1705_v1 = vcombine.high %v1424_v53, %v6070_v56  ;;  %v1712_v46 = vrot.slane %v1424_v53, %v6852_v55  ;;  %5817 = vmatprep.subr.mxu1 %v6070_v56  ;;  %v1785_v62 = vrot.slane %v1771_v7, %v6852_v55  ;;  %v1786_v37 = vcombine.low %v6856_v59, %v1778_v25 }
 0x3fa   :  { %v1787_v40 = vcombine.high %v6856_v59, %v1778_v25  ;;  %5843 = vmatpush3.msra.mxu0 %v1831_v23  ;;  %5844 = vmatprep.mubr.msk.f32.mxu0 %vm6071_vm11, %v6070_v56  ;;  %v1604_v52 = vcombine.low %v1572_v51, %v1587_v48  ;;  %v1620_v53 = vcombine.high %v7049_v16, %v6070_v56  ;;  %v1836_v23 = vld [vmem:[%s7414_s4 + $0x70] sm:$0xff] }
 0x3fb   :  { %v1719_v26 = vrot.slane %v1705_v1, %v6852_v55  ;;  %v1720_v11 = vcombine.low %v6863_v38, %v1712_v46  ;;  %v1721_v24 = vcombine.high %v6863_v38, %v1712_v46  ;;  %5815 = vmatmul.mubr.msk.f32.vlgmr.msra.gmra.mxu1 %vm7527_vm9, %v1489_v3  ;;  %v6962_v60 = vrot.slane %v1786_v37, %v6874_v28  ;;  %v1843_v1 = vld [vmem:[%s7414_s4 + $0xa8] sm:$0xff]  ;;  %v1845_v37 = vld [vmem:[%s7414_s4 + $0xb8] sm:$0xff]  ;;  %vm7541_vm9 = vmmov %vm7535_vm0 }
 0x3fc   :  { %v6965_v59 = vrot.slane %v1787_v40, %v6874_v28  ;;  %v1802_v57 = vcombine.low %v6859_v43, %v1785_v62  ;;  %v1803_v54 = vcombine.high %v6859_v43, %v1785_v62  ;;  %5818 = vmatpush3.msra.mxu1 %v1826_v5  ;;  %5845 = vmatmul.mubr.msk.f32.vlgmr.msra.gmra.mxu0 %vm7528_vm13, %v1554_v6  ;;  %v1840_v6 = vld [vmem:[%s7414_s4 + $0x90] sm:$0xff]  ;;  %vm7542_vm13 = vmmov %vm7535_vm0 }
 0x3fd   :  { %v6970_v36 = vrot.slane %v1720_v11, %v6874_v28  ;;  %v6973_v38 = vrot.slane %v1721_v24, %v6874_v28  ;;  %v1736_v27 = vcombine.low %v6866_v10, %v1719_v26  ;;  %v1737_v21 = vcombine.high %v6866_v10, %v1719_v26  ;;  %5852 = vmatprep.subr.mxu0 %v6070_v56 }
 0x3fe   :  { %v6983_v43 = vrot.slane %v1802_v57, %v6874_v28  ;;  %v6986_v30 = vrot.slane %v1803_v54, %v6874_v28  ;;  %5819 = vmatprep.mubr.msk.f32.mxu1 %vm6071_vm11, %v6070_v56  ;;  %5827 = vmatprep.subr.mxu1 %v6070_v56  ;;  %v1605_v7 = vcombine.high %v1572_v51, %v1587_v48  ;;  %v1847_v57 = vld [vmem:[%s7414_s4 + $0xc8] sm:$0xff]  ;;  %v1856_v51 = vld [vmem:[%s7414_s4 + $0x110] sm:$0xff] }
 0x3ff   :  { %v6991_v10 = vrot.slane %v1736_v27, %v6874_v28  ;;  %v6994_v13 = vrot.slane %v1737_v21, %v6874_v28  ;;  %5853 = vmatpush3.msra.mxu0 %v1833_v15  ;;  %5854 = vmatprep.mubr.msk.f32.mxu0 %vm6071_vm11, %v6070_v56  ;;  %v1612_v25 = vrot.slane %v1604_v52, %v6874_v28  ;;  %v1842_v27 = vld [vmem:[%s7414_s4 + $0xa0] sm:$0xff]  ;;  %v1859_v48 = vld [vmem:[%s7414_s4 + $0x128] sm:$0xff] }
 0x400   :  { %5820 = vmatmul.mubr.msk.f32.vlgmr.msra.gmra.mxu1 %vm7529_vm14, %v6884_v61  ;;  %5855 = vmatmul.mubr.msk.f32.vlgmr.msra.gmra.mxu0 %vm7530_vm6, %v1555_v33  ;;  %v1830_v61 = vld [vmem:[%s7414_s4 + $0x40] sm:$0xff]  ;;  %v1621_v22 = vcombine.high %v7069_v12, %v6070_v56  ;;  %v1631_v46 = vrot.slane %v1417_v2, %v6852_v55  ;;  %v1619_v5 = vrot.slane %v1605_v7, %v6874_v28  ;;  %vm7543_vm14 = vmmov %vm7535_vm0 }
 0x401   :  { %5828 = vmatpush3.msra.mxu1 %v1828_v4  ;;  %5862 = vmatprep.subr.mxu0 %v6070_v56  ;;  %v1622_v62 = vcombine.high %v1612_v25, %v6070_v56  ;;  %v1624_v40 = vcombine.high %v1417_v2, %v6070_v56  ;;  %vm7544_vm6 = vmmov %vm7535_vm0  ;;  %v1818_v52 = vcombine.high %v6962_v60, %v6070_v56  ;;  %v1862_v2 = vld [vmem:[%s7414_s4 + $0x140] sm:$0xff] }
 0x402   :  { %5829 = vmatprep.mubr.msk.f32.mxu1 %vm6071_vm11, %v6070_v56  ;;  %5837 = vmatprep.subr.mxu1 %v6070_v56  ;;  %v1623_v24 = vcombine.high %v1619_v5, %v6070_v56  ;;  %v1821_v7 = vcombine.high %v6986_v30, %v6070_v56 }
 0x403   :  { %5863 = vmatpush3.msra.mxu0 %v1835_v35  ;;  %5864 = vmatprep.mubr.msk.f32.mxu0 %vm6071_vm11, %v6070_v56  ;;  %v1638_v54 = vrot.slane %v1624_v40, %v6852_v55  ;;  %v1846_v35 = vld [vmem:[%s7414_s4 + $0xc0] sm:$0xff] }
 0x404   :  { %5830 = vmatmul.mubr.msk.f32.vlgmr.msra.gmra.mxu1 %vm7505_vm1, %v6902_v20  ;;  %5865 = vmatmul.mubr.msk.f32.vlgmr.msra.gmra.mxu0 %vm7531_vm3, %v1556_v41  ;;  %v1832_v20 = vld [vmem:[%s7414_s4 + $0x50] sm:$0xff]  ;;  %vm7545_vm1 = vmmov %vm7535_vm0 }
 0x405   :  { %5838 = vmatpush3.msra.mxu1 %v1830_v61  ;;  %5872 = vmatprep.subr.mxu0 %v6070_v56  ;;  %vm7546_vm3 = vmmov %vm7535_vm0  ;;  %v1853_v61 = vld [vmem:[%s7414_s4 + $0xf8] sm:$0xff] }
 0x406   :  { %5839 = vmatprep.mubr.msk.f32.mxu1 %vm6071_vm11, %v6070_v56  ;;  %5847 = vmatprep.subr.mxu1 %v6070_v56 }
 0x407   :  { %5873 = vmatpush3.msra.mxu0 %v1837_v17  ;;  %5874 = vmatprep.mubr.msk.f32.mxu0 %vm6071_vm11, %v6070_v56  ;;  %v1752_v17 = vcombine.high %v6970_v36, %v6070_v56 }
 0x408   :  { %5840 = vmatmul.mubr.msk.f32.vlgmr.msra.gmra.mxu1 %vm7532_vm4, %v6927_v29  ;;  %5875 = vmatmul.mubr.msk.f32.vlgmr.msra.gmra.mxu0 %vm7533_vm15, %v1557_v42  ;;  %v1646_v29 = vrot.slane %v1423_v44, %v6852_v55  ;;  %vm7547_vm4 = vmmov %vm7535_vm0  ;;  %v1852_v42 = vld [vmem:[%s7414_s4 + $0xf0] sm:$0xff] }
 0x409   :  { %5848 = vmatpush3.msra.mxu1 %v1832_v20  ;;  %5882 = vmatprep.subr.mxu0 %v6070_v56  ;;  %vm7548_vm15 = vmmov %vm7535_vm0  ;;  %v1753_v20 = vcombine.high %v6973_v38, %v6070_v56 }
 0x40a   :  { %5849 = vmatprep.mubr.msk.f32.mxu1 %vm6071_vm11, %v6070_v56  ;;  %5857 = vmatprep.subr.mxu1 %v6070_v56  ;;  %v1654_v3 = vcombine.low %v1631_v46, %v1646_v29  ;;  %v1655_v9 = vcombine.high %v1631_v46, %v1646_v29  ;;  %v1820_v29 = vcombine.high %v6983_v43, %v6070_v56 }
 0x40b   :  { %5883 = vmatpush3.msra.mxu0 %v1839_v63  ;;  %5884 = vmatprep.mubr.msk.f32.mxu0 %vm6071_vm11, %v6070_v56  ;;  %v1861_v63 = vld [vmem:[%s7414_s4 + $0x138] sm:$0xff] }
 0x40c   :  { %5850 = vmatmul.mubr.msk.f32.vlgmr.msra.gmra.mxu1 %vm7534_vm2, %v6939_v18  ;;  %5885 = vmatmul.mubr.msk.f32.vlgmr.msra.gmra.mxu0 %vm7535_vm0, %v1620_v53  ;;  %v1639_v18 = vcombine.high %v1423_v44, %v6070_v56  ;;  %v1662_v11 = vrot.slane %v1654_v3, %v6874_v28  ;;  %v1669_v21 = vrot.slane %v1655_v9, %v6874_v28  ;;  %vm7549_vm2 = vmmov %vm7535_vm0  ;;  %v1860_v53 = vld [vmem:[%s7414_s4 + $0x130] sm:$0xff] }
 0x40d   :  { %5858 = vmatpush3.msra.mxu1 %v1834_v19  ;;  %5892 = vmatprep.subr.mxu0 %v6070_v56  ;;  %v1755_v44 = vcombine.high %v6994_v13, %v6070_v56  ;;  %v1863_v19 = vld [vmem:[%s7414_s4 + $0x148] sm:$0xff] }
 0x40e   :  { %5859 = vmatprep.mubr.msk.f32.mxu1 %vm6071_vm11, %v6070_v56  ;;  %5867 = vmatprep.subr.mxu1 %v6070_v56  ;;  %v1653_v26 = vrot.slane %v1639_v18, %v6852_v55  ;;  %v1686_v31 = vcombine.high %v1662_v11, %v6070_v56  ;;  %v1849_v55 = vld [vmem:[%s7414_s4 + $0xd8] sm:$0xff]  ;;  %v1687_v33 = vcombine.high %v1669_v21, %v6070_v56 }
 0x40f   :  { %5893 = vmatpush3.msra.mxu0 %v1841_v0  ;;  %5894 = vmatprep.mubr.msk.f32.mxu0 %vm6071_vm11, %v6070_v56  ;;  %v1819_v0 = vcombine.high %v6965_v59, %v6070_v56 }
 0x410   :  { %5860 = vmatmul.mubr.msk.f32.vlgmr.msra.gmra.mxu1 %vm7536_vm10, %v7002_v32  ;;  %5895 = vmatmul.mubr.msk.f32.vlgmr.msra.gmra.mxu0 %vm7537_vm12, %v1621_v22  ;;  %v1670_v15 = vcombine.low %v1638_v54, %v1653_v26  ;;  %v1671_v4 = vcombine.high %v1638_v54, %v1653_v26  ;;  %vm7550_vm10 = vmmov %vm7535_vm0 }
 0x411   :  { %5868 = vmatpush3.msra.mxu1 %v1836_v23  ;;  %5902 = vmatprep.subr.mxu0 %v6070_v56  ;;  %vm7551_vm12 = vmmov %vm7535_vm0  ;;  %v1864_v23 = vld [vmem:[%s7414_s4 + $0x150] sm:$0xff] }
 0x412   :  { %5869 = vmatprep.mubr.msk.f32.mxu1 %vm6071_vm11, %v6070_v56  ;;  %5877 = vmatprep.subr.mxu1 %v6070_v56  ;;  %v1678_v32 = vrot.slane %v1670_v15, %v6874_v28  ;;  %v1685_v39 = vrot.slane %v1671_v4, %v6874_v28  ;;  %v1848_v28 = vld [vmem:[%s7414_s4 + $0xd0] sm:$0xff] }
 0x413   :  { %5903 = vmatpush3.msra.mxu0 %v1843_v1  ;;  %5904 = vmatprep.mubr.msk.f32.mxu0 %vm6071_vm11, %v6070_v56 }
 0x414   :  { %5870 = vmatmul.mubr.msk.f32.vlgmr.msra.gmra.mxu1 %vm7538_vm7, %v7018_v14  ;;  %5905 = vmatmul.mubr.msk.f32.vlgmr.msra.gmra.mxu0 %vm7539_vm5, %v1622_v62  ;;  %v1688_v14 = vcombine.high %v1678_v32, %v6070_v56  ;;  %v1689_v41 = vcombine.high %v1685_v39, %v6070_v56  ;;  %vm7552_vm7 = vmmov %vm7535_vm0 }
 0x415   :  { %5878 = vmatpush3.msra.mxu1 %v1838_v58  ;;  %5912 = vmatprep.subr.mxu0 %v6070_v56  ;;  %vm7553_vm5 = vmmov %vm7535_vm0 }
 0x416   :  { %5879 = vmatprep.mubr.msk.f32.mxu1 %vm6071_vm11, %v6070_v56  ;;  %5887 = vmatprep.subr.mxu1 %v6070_v56 }
 0x417   :  { %5913 = vmatpush3.msra.mxu0 %v1845_v37  ;;  %5914 = vmatprep.mubr.msk.f32.mxu0 %vm6071_vm11, %v6070_v56 }
 0x418   :  { %5880 = vmatmul.mubr.msk.f32.vlgmr.msra.gmra.mxu1 %vm7540_vm8, %v7049_v16  ;;  %5915 = vmatmul.mubr.msk.f32.vlgmr.msra.gmra.mxu0 %vm7541_vm9, %v1623_v24  ;;  %v1754_v16 = vcombine.high %v6991_v10, %v6070_v56  ;;  %vm7554_vm8 = vmmov %vm7535_vm0 }
 0x419   :  { %5888 = vmatpush3.msra.mxu1 %v1840_v6  ;;  %5922 = vmatprep.subr.mxu0 %v6070_v56  ;;  %vm7555_vm9 = vmmov %vm7535_vm0 }
 0x41a   :  { %5889 = vmatprep.mubr.msk.f32.mxu1 %vm6071_vm11, %v6070_v56  ;;  %5897 = vmatprep.subr.mxu1 %v6070_v56 }
 0x41b   :  { %5923 = vmatpush3.msra.mxu0 %v1847_v57  ;;  %5924 = vmatprep.mubr.msk.f32.mxu0 %vm6071_vm11, %v6070_v56 }
 0x41c   :  { %5890 = vmatmul.mubr.msk.f32.vlgmr.msra.gmra.mxu1 %vm7542_vm13, %v7069_v12  ;;  %5925 = vmatmul.mubr.msk.f32.vlgmr.msra.gmra.mxu0 %vm7543_vm14, %v1686_v31  ;;  %vm7556_vm13 = vmmov %vm7535_vm0  ;;  %v1858_v12 = vld [vmem:[%s7414_s4 + $0x120] sm:$0xff] }
 0x41d   :  { %5898 = vmatpush3.msra.mxu1 %v1842_v27  ;;  %5932 = vmatprep.subr.mxu0 %v6070_v56  ;;  %vm7557_vm14 = vmmov %vm7535_vm0 }
 0x41e   :  { %5899 = vmatprep.mubr.msk.f32.mxu1 %vm6071_vm11, %v6070_v56  ;;  %5907 = vmatprep.subr.mxu1 %v6070_v56 }
 0x41f   :  { %5933 = vmatpush3.msra.mxu0 %v1849_v55  ;;  %5934 = vmatprep.mubr.msk.f32.mxu0 %vm6071_vm11, %v6070_v56 }
 0x420   :  { %5900 = vmatmul.mubr.msk.f32.vlgmr.msra.gmra.mxu1 %vm7544_vm6, %v1612_v25  ;;  %5935 = vmatmul.mubr.msk.f32.vlgmr.msra.gmra.mxu0 %vm7545_vm1, %v1687_v33  ;;  %vm7558_vm6 = vmmov %vm7535_vm0 }
 0x421   :  { %5908 = vmatpush3.msra.mxu1 %v1844_v45  ;;  %5942 = vmatprep.subr.mxu0 %v6070_v56  ;;  %vm7559_vm1 = vmmov %vm7535_vm0 }
 0x422   :  { %5909 = vmatprep.mubr.msk.f32.mxu1 %vm6071_vm11, %v6070_v56  ;;  %5917 = vmatprep.subr.mxu1 %v6070_v56 }
 0x423   :  { %5943 = vmatpush3.msra.mxu0 %v1851_v8  ;;  %5944 = vmatprep.mubr.msk.f32.mxu0 %vm6071_vm11, %v6070_v56 }
 0x424   :  { %5910 = vmatmul.mubr.msk.f32.vlgmr.msra.gmra.mxu1 %vm7546_vm3, %v1619_v5  ;;  %5945 = vmatmul.mubr.msk.f32.vlgmr.msra.gmra.mxu0 %vm7547_vm4, %v1688_v14  ;;  %vm7560_vm3 = vmmov %vm7535_vm0 }
 0x425   :  { %5918 = vmatpush3.msra.mxu1 %v1846_v35  ;;  %5952 = vmatprep.subr.mxu0 %v6070_v56  ;;  %vm7561_vm4 = vmmov %vm7535_vm0 }
 0x426   :  { %5919 = vmatprep.mubr.msk.f32.mxu1 %vm6071_vm11, %v6070_v56  ;;  %5927 = vmatprep.subr.mxu1 %v6070_v56 }
 0x427   :  { %5953 = vmatpush3.msra.mxu0 %v1853_v61  ;;  %5954 = vmatprep.mubr.msk.f32.mxu0 %vm6071_vm11, %v6070_v56 }
 0x428   :  { %5920 = vmatmul.mubr.msk.f32.vlgmr.msra.gmra.mxu1 %vm7548_vm15, %v1662_v11  ;;  %5955 = vmatmul.mubr.msk.f32.vlgmr.msra.gmra.mxu0 %vm7549_vm2, %v1689_v41  ;;  %vm7562_vm15 = vmmov %vm7535_vm0 }
 0x429   :  { %5928 = vmatpush3.msra.mxu1 %v1848_v28  ;;  %5962 = vmatprep.subr.mxu0 %v6070_v56  ;;  %vm7563_vm2 = vmmov %vm7535_vm0 }
 0x42a   :  { %5929 = vmatprep.mubr.msk.f32.mxu1 %vm6071_vm11, %v6070_v56  ;;  %5937 = vmatprep.subr.mxu1 %v6070_v56 }
 0x42b   :  { %5963 = vmatpush3.msra.mxu0 %v1855_v50  ;;  %5964 = vmatprep.mubr.msk.f32.mxu0 %vm6071_vm11, %v6070_v56 }
 0x42c   :  { %5930 = vmatmul.mubr.msk.f32.vlgmr.msra.gmra.mxu1 %vm7535_vm0, %v1669_v21  ;;  %5965 = vmatmul.mubr.msk.f32.vlgmr.msra.gmra.mxu0 %vm7550_vm10, %v1752_v17  ;;  %vm7564_vm10 = vmmov %vm7535_vm0 }
 0x42d   :  { %5938 = vmatpush3.msra.mxu1 %v1850_v34  ;;  %5972 = vmatprep.subr.mxu0 %v6070_v56 }
 0x42e   :  { %5939 = vmatprep.mubr.msk.f32.mxu1 %vm6071_vm11, %v6070_v56  ;;  %5947 = vmatprep.subr.mxu1 %v6070_v56 }
 0x42f   :  { %5973 = vmatpush3.msra.mxu0 %v1857_v47  ;;  %5974 = vmatprep.mubr.msk.f32.mxu0 %vm6071_vm11, %v6070_v56 }
 0x430   :  { %5940 = vmatmul.mubr.msk.f32.vlgmr.msra.gmra.mxu1 %vm7551_vm12, %v1678_v32  ;;  %5975 = vmatmul.mubr.msk.f32.vlgmr.msra.gmra.mxu0 %vm7552_vm7, %v1753_v20  ;;  %vm7565_vm12 = vmmov %vm7535_vm0 }
 0x431   :  { %5948 = vmatpush3.msra.mxu1 %v1852_v42  ;;  %5982 = vmatprep.subr.mxu0 %v6070_v56  ;;  %vm7566_vm7 = vmmov %vm7535_vm0 }
 0x432   :  { %5949 = vmatprep.mubr.msk.f32.mxu1 %vm6071_vm11, %v6070_v56  ;;  %5957 = vmatprep.subr.mxu1 %v6070_v56 }
 0x433   :  { %5983 = vmatpush3.msra.mxu0 %v1859_v48  ;;  %5984 = vmatprep.mubr.msk.f32.mxu0 %vm6071_vm11, %v6070_v56 }
 0x434   :  { %5950 = vmatmul.mubr.msk.f32.vlgmr.msra.gmra.mxu1 %vm7553_vm5, %v1685_v39  ;;  %5985 = vmatmul.mubr.msk.f32.vlgmr.msra.gmra.mxu0 %vm7554_vm8, %v1754_v16  ;;  %vm5374_vm5 = vcmask 33792  }
 0x435   :  { %5958 = vmatpush3.msra.mxu1 %v1854_v49  ;;  %5992 = vmatprep.subr.mxu0 %v6070_v56 }
 0x436   :  { %5959 = vmatprep.mubr.msk.f32.mxu1 %vm6071_vm11, %v6070_v56  ;;  %5967 = vmatprep.subr.mxu1 %v6070_v56 }
 0x437   :  { %5993 = vmatpush3.msra.mxu0 %v1861_v63  ;;  %5994 = vmatprep.mubr.msk.f32.mxu0 %vm6071_vm11, %v6070_v56 }
 0x438   :  { %5960 = vmatmul.mubr.msk.f32.vlgmr.msra.gmra.mxu1 %vm7555_vm9, %v6970_v36  ;;  %5995 = vmatmul.mubr.msk.f32.vlgmr.msra.gmra.mxu0 %vm7556_vm13, %v1755_v44  ;;  %v1865_v36 = vld [vmem:[%s7414_s4 + $0x158] sm:$0xff] }
 0x439   :  { %5968 = vmatpush3.msra.mxu1 %v1856_v51  ;;  %6002 = vmatprep.subr.mxu0 %v6070_v56 }
 0x43a   :  { %5969 = vmatprep.mubr.msk.f32.mxu1 %vm6071_vm11, %v6070_v56  ;;  %5977 = vmatprep.subr.mxu1 %v6070_v56 }
 0x43b   :  { %6003 = vmatpush3.msra.mxu0 %v1863_v19  ;;  %6004 = vmatprep.mubr.msk.f32.mxu0 %vm6071_vm11, %v6070_v56 }
 0x43c   :  { %5970 = vmatmul.mubr.msk.f32.vlgmr.msra.gmra.mxu1 %vm7557_vm14, %v6973_v38  ;;  %6005 = vmatmul.mubr.msk.f32.vlgmr.msra.gmra.mxu0 %vm7558_vm6, %v1818_v52  ;;  %v1867_v38 = vld [vmem:[%s7414_s4 + $0x168] sm:$0xff] }
 0x43d   :  { %5978 = vmatpush3.msra.mxu1 %v1858_v12  ;;  %6012 = vmatprep.subr.mxu0 %v6070_v56 }
 0x43e   :  { %5979 = vmatprep.mubr.msk.f32.mxu1 %vm6071_vm11, %v6070_v56  ;;  %5987 = vmatprep.subr.mxu1 %v6070_v56 }
 0x43f   :  { %6013 = vmatpush3.msra.mxu0 %v1865_v36  ;;  %6014 = vmatprep.mubr.msk.f32.mxu0 %vm6071_vm11, %v6070_v56 }
 0x440   :  { %5980 = vmatmul.mubr.msk.f32.vlgmr.msra.gmra.mxu1 %vm7559_vm1, %v6991_v10  ;;  %6015 = vmatmul.mubr.msk.f32.vlgmr.msra.gmra.mxu0 %vm7560_vm3, %v1819_v0  ;;  %v1869_v10 = vld [vmem:[%s7414_s4 + $0x178] sm:$0xff] }
 0x441   :  { %5988 = vmatpush3.msra.mxu1 %v1860_v53  ;;  %6022 = vmatprep.subr.mxu0 %v6070_v56 }
 0x442   :  { %5989 = vmatprep.mubr.msk.f32.mxu1 %vm6071_vm11, %v6070_v56  ;;  %5997 = vmatprep.subr.mxu1 %v6070_v56 }
 0x443   :  { %6023 = vmatpush3.msra.mxu0 %v1867_v38  ;;  %6024 = vmatprep.mubr.msk.f32.mxu0 %vm6071_vm11, %v6070_v56 }
 0x444   :  { %5990 = vmatmul.mubr.msk.f32.vlgmr.msra.gmra.mxu1 %vm7561_vm4, %v6994_v13  ;;  %6025 = vmatmul.mubr.msk.f32.vlgmr.msra.gmra.mxu0 %vm7562_vm15, %v1820_v29  ;;  %v1866_v13 = vld [vmem:[%s7414_s4 + $0x160] sm:$0xff] }
 0x445   :  { %5998 = vmatpush3.msra.mxu1 %v1862_v2  ;;  %6032 = vmatprep.subr.mxu0 %v6070_v56 }
 0x446   :  { %5999 = vmatprep.mubr.msk.f32.mxu1 %vm6071_vm11, %v6070_v56  ;;  %6007 = vmatprep.subr.mxu1 %v6070_v56 }
 0x447   :  { %6033 = vmatpush3.msra.mxu0 %v1869_v10  ;;  %6034 = vmatprep.mubr.msk.f32.mxu0 %vm6071_vm11, %v6070_v56 }
 0x448   :  { %6000 = vmatmul.mubr.msk.f32.vlgmr.msra.gmra.mxu1 %vm7563_vm2, %v6962_v60  ;;  %6035 = vmatmul.mubr.msk.f32.vlgmr.msra.gmra.mxu0 %vm7535_vm0, %v1821_v7  ;;  %v1868_v60 = vld [vmem:[%s7414_s4 + $0x170] sm:$0xff] }
 0x449   :  { %6008 = vmatpush3.msra.mxu1 %v1864_v23  ;;  %6009 = vmatprep.mubr.msk.f32.mxu1 %vm6071_vm11, %v6070_v56 }
 0x44a   :  { %6017 = vmatprep.subr.mxu1 %v6070_v56 }
 0x44c   :  { %6010 = vmatmul.mubr.msk.f32.vlgmr.msra.gmra.mxu1 %vm7564_vm10, %v6965_v59 }
 0x44d   :  { %6018 = vmatpush3.msra.mxu1 %v1866_v13  ;;  %6019 = vmatprep.mubr.msk.f32.mxu1 %vm6071_vm11, %v6070_v56 }
 0x44e   :  { %6027 = vmatprep.subr.mxu1 %v6070_v56 }
 0x450   :  { %6020 = vmatmul.mubr.msk.f32.vlgmr.msra.gmra.mxu1 %vm7565_vm12, %v6983_v43 }
 0x451   :  { %6028 = vmatpush3.msra.mxu1 %v1868_v60  ;;  %6029 = vmatprep.mubr.msk.f32.mxu1 %vm6071_vm11, %v6070_v56 }
 0x454   :  { %6030 = vmatmul.mubr.msk.f32.vlgmr.msra.gmra.mxu1 %vm7566_vm7, %v6986_v30 }
 0x4af   :  { %v1939_v59 = vpop.f32.mrf.mxu1 }
 0x4b0   :  { %v5375_v40 = vsel %vm5374_vm5, %v1939_v59, 0.0 }
 0x4b1   :  { %v5801_v25 = vpop.f32.mrf.mxu1 }
 0x4b3   :  { %v2012_v22 = vpop.f32.mrf.mxu1  ;;  %v2304_v1 = vpop.f32.mrf.mxu0 }
 0x4b4   :  { %v5376_v43 = vsel %vm5374_vm5, %v2012_v22, 0.0  ;;  %v5384_v55 = vsel %vm5374_vm5, %v2304_v1, 0.0 }
 0x4b5   :  { %v5806_v46 = vpop.f32.mrf.mxu1  ;;  %v5826_v18 = vpop.f32.mrf.mxu0  ;;  %v5377_v26 = vadd.f32 %v5376_v43, %v5375_v40 }
 0x4b7   :  { %v2085_v58 = vpop.f32.mrf.mxu1  ;;  %v2450_v3 = vpop.f32.mrf.mxu0 }
 0x4b8   :  { %v5378_v56 = vsel %vm5374_vm5, %v2085_v58, 0.0  ;;  %v5388_v14 = vsel %vm5374_vm5, %v2450_v3, 0.0 }
 0x4b9   :  { %v5811_v5 = vpop.f32.mrf.mxu1  ;;  %v5836_v62 = vpop.f32.mrf.mxu0  ;;  %v5379_v11 = vadd.f32 %v5378_v56, %v5377_v26 }
 0x4bb   :  { %v2158_v37 = vpop.f32.mrf.mxu1 }
 0x4bc   :  { %v2596_v30 = vpop.f32.mrf.mxu0  ;;  %v5380_v9 = vsel %vm5374_vm5, %v2158_v37, 0.0 }
 0x4bd   :  { %v5816_v6 = vpop.f32.mrf.mxu1  ;;  %v5381_v57 = vadd.f32 %v5380_v9, %v5379_v11  ;;  %v5392_v42 = vsel %vm5374_vm5, %v2596_v30, 0.0 }
 0x4be   :  { %v5846_v24 = vpop.f32.mrf.mxu0 }
 0x4c0   :  { %v2231_v54 = vpop.f32.mrf.mxu1  ;;  %v2742_v21 = vpop.f32.mrf.mxu0 }
 0x4c1   :  { %v5382_v27 = vsel %vm5374_vm5, %v2231_v54, 0.0  ;;  %v5396_v19 = vsel %vm5374_vm5, %v2742_v21, 0.0 }
 0x4c2   :  { %v5383_v15 = vadd.f32 %v5382_v27, %v5381_v57  ;;  %v5821_v31 = vpop.f32.mrf.mxu1  ;;  %v5856_v45 = vpop.f32.mrf.mxu0 }
 0x4c4   :  { %v2377_v4 = vpop.f32.mrf.mxu1  ;;  %v5385_v32 = vadd.f32 %v5384_v55, %v5383_v15  ;;  %v2888_v8 = vpop.f32.mrf.mxu0 }
 0x4c5   :  { %v5386_v33 = vsel %vm5374_vm5, %v2377_v4, 0.0  ;;  %v5400_v29 = vsel %vm5374_vm5, %v2888_v8, 0.0 }
 0x4c6   :  { %v5387_v35 = vadd.f32 %v5386_v33, %v5385_v32  ;;  %v5831_v39 = vpop.f32.mrf.mxu1  ;;  %v5866_v61 = vpop.f32.mrf.mxu0 }
 0x4c8   :  { %v2523_v28 = vpop.f32.mrf.mxu1  ;;  %v5389_v41 = vadd.f32 %v5388_v14, %v5387_v35  ;;  %v3034_v34 = vpop.f32.mrf.mxu0 }
 0x4c9   :  { %v5390_v50 = vsel %vm5374_vm5, %v2523_v28, 0.0  ;;  %v5404_v22 = vsel %vm5374_vm5, %v3034_v34, 0.0 }
 0x4ca   :  { %v5391_v17 = vadd.f32 %v5390_v50, %v5389_v41  ;;  %v5841_v47 = vpop.f32.mrf.mxu1  ;;  %v5876_v20 = vpop.f32.mrf.mxu0 }
 0x4cc   :  { %v2669_v48 = vpop.f32.mrf.mxu1  ;;  %v5393_v49 = vadd.f32 %v5392_v42, %v5391_v17  ;;  %v3180_v63 = vpop.f32.mrf.mxu0 }
 0x4cd   :  { %v5394_v16 = vsel %vm5374_vm5, %v2669_v48, 0.0  ;;  %v5408_v43 = vsel %vm5374_vm5, %v3180_v63, 0.0 }
 0x4ce   :  { %v5395_v51 = vadd.f32 %v5394_v16, %v5393_v49  ;;  %v5851_v44 = vpop.f32.mrf.mxu1  ;;  %v5886_v12 = vpop.f32.mrf.mxu0 }
 0x4d0   :  { %v2815_v52 = vpop.f32.mrf.mxu1  ;;  %v5397_v36 = vadd.f32 %v5396_v19, %v5395_v51  ;;  %v3326_v0 = vpop.f32.mrf.mxu0 }
 0x4d1   :  { %v5398_v53 = vsel %vm5374_vm5, %v2815_v52, 0.0  ;;  %v5412_v11 = vsel %vm5374_vm5, %v3326_v0, 0.0 }
 0x4d2   :  { %v5399_v38 = vadd.f32 %v5398_v53, %v5397_v36  ;;  %v5861_v2 = vpop.f32.mrf.mxu1  ;;  %v5896_v10 = vpop.f32.mrf.mxu0 }
 0x4d4   :  { %v2961_v23 = vpop.f32.mrf.mxu1  ;;  %v5401_v7 = vadd.f32 %v5400_v29, %v5399_v38  ;;  %v3472_v60 = vpop.f32.mrf.mxu0 }
 0x4d5   :  { %v5402_v13 = vsel %vm5374_vm5, %v2961_v23, 0.0  ;;  %v5416_v55 = vsel %vm5374_vm5, %v3472_v60, 0.0 }
 0x4d6   :  { %v5403_v59 = vadd.f32 %v5402_v13, %v5401_v7  ;;  %v5871_v25 = vpop.f32.mrf.mxu1  ;;  %v5906_v1 = vpop.f32.mrf.mxu0 }
 0x4d8   :  { %v3107_v46 = vpop.f32.mrf.mxu1  ;;  %v5405_v18 = vadd.f32 %v5404_v22, %v5403_v59  ;;  %v3618_v3 = vpop.f32.mrf.mxu0 }
 0x4d9   :  { %v5406_v58 = vsel %vm5374_vm5, %v3107_v46, 0.0  ;;  %v5420_v14 = vsel %vm5374_vm5, %v3618_v3, 0.0 }
 0x4da   :  { %v5407_v5 = vadd.f32 %v5406_v58, %v5405_v18  ;;  %v5881_v62 = vpop.f32.mrf.mxu1  ;;  %v5916_v37 = vpop.f32.mrf.mxu0 }
 0x4dc   :  { %v3253_v40 = vpop.f32.mrf.mxu1  ;;  %v5409_v56 = vadd.f32 %v5408_v43, %v5407_v5  ;;  %v3764_v30 = vpop.f32.mrf.mxu0 }
 0x4dd   :  { %v5410_v26 = vsel %vm5374_vm5, %v3253_v40, 0.0  ;;  %v5424_v42 = vsel %vm5374_vm5, %v3764_v30, 0.0 }
 0x4de   :  { %v5411_v6 = vadd.f32 %v5410_v26, %v5409_v56  ;;  %v5891_v9 = vpop.f32.mrf.mxu1  ;;  %v5926_v24 = vpop.f32.mrf.mxu0 }
 0x4e0   :  { %v3399_v57 = vpop.f32.mrf.mxu1  ;;  %v5413_v54 = vadd.f32 %v5412_v11, %v5411_v6  ;;  %v3910_v21 = vpop.f32.mrf.mxu0 }
 0x4e1   :  { %v5414_v27 = vsel %vm5374_vm5, %v3399_v57, 0.0  ;;  %v5428_v19 = vsel %vm5374_vm5, %v3910_v21, 0.0 }
 0x4e2   :  { %v5415_v15 = vadd.f32 %v5414_v27, %v5413_v54  ;;  %v5901_v31 = vpop.f32.mrf.mxu1  ;;  %v5936_v45 = vpop.f32.mrf.mxu0 }
 0x4e4   :  { %v3545_v4 = vpop.f32.mrf.mxu1  ;;  %v5417_v32 = vadd.f32 %v5416_v55, %v5415_v15  ;;  %v4056_v8 = vpop.f32.mrf.mxu0 }
 0x4e5   :  { %v5418_v33 = vsel %vm5374_vm5, %v3545_v4, 0.0  ;;  %v5432_v29 = vsel %vm5374_vm5, %v4056_v8, 0.0 }
 0x4e6   :  { %v5419_v35 = vadd.f32 %v5418_v33, %v5417_v32  ;;  %v5911_v39 = vpop.f32.mrf.mxu1  ;;  %v5946_v61 = vpop.f32.mrf.mxu0 }
 0x4e8   :  { %v3691_v28 = vpop.f32.mrf.mxu1  ;;  %v5421_v41 = vadd.f32 %v5420_v14, %v5419_v35  ;;  %v4202_v34 = vpop.f32.mrf.mxu0 }
 0x4e9   :  { %v5422_v50 = vsel %vm5374_vm5, %v3691_v28, 0.0  ;;  %v5436_v22 = vsel %vm5374_vm5, %v4202_v34, 0.0 }
 0x4ea   :  { %v5423_v17 = vadd.f32 %v5422_v50, %v5421_v41  ;;  %v5921_v47 = vpop.f32.mrf.mxu1  ;;  %v5956_v20 = vpop.f32.mrf.mxu0 }
 0x4ec   :  { %v3837_v48 = vpop.f32.mrf.mxu1  ;;  %v5425_v49 = vadd.f32 %v5424_v42, %v5423_v17  ;;  %v4348_v63 = vpop.f32.mrf.mxu0 }
 0x4ed   :  { %v5426_v16 = vsel %vm5374_vm5, %v3837_v48, 0.0  ;;  %v5440_v43 = vsel %vm5374_vm5, %v4348_v63, 0.0 }
 0x4ee   :  { %v5427_v51 = vadd.f32 %v5426_v16, %v5425_v49  ;;  %v5931_v44 = vpop.f32.mrf.mxu1  ;;  %v5966_v12 = vpop.f32.mrf.mxu0 }
 0x4f0   :  { %v3983_v52 = vpop.f32.mrf.mxu1  ;;  %v5429_v36 = vadd.f32 %v5428_v19, %v5427_v51  ;;  %v4494_v0 = vpop.f32.mrf.mxu0 }
 0x4f1   :  { %v5430_v53 = vsel %vm5374_vm5, %v3983_v52, 0.0  ;;  %v5444_v11 = vsel %vm5374_vm5, %v4494_v0, 0.0 }
 0x4f2   :  { %v5431_v38 = vadd.f32 %v5430_v53, %v5429_v36  ;;  %v5941_v2 = vpop.f32.mrf.mxu1  ;;  %v5976_v10 = vpop.f32.mrf.mxu0 }
 0x4f4   :  { %v4129_v23 = vpop.f32.mrf.mxu1  ;;  %v5433_v7 = vadd.f32 %v5432_v29, %v5431_v38  ;;  %v4640_v60 = vpop.f32.mrf.mxu0 }
 0x4f5   :  { %v5434_v13 = vsel %vm5374_vm5, %v4129_v23, 0.0  ;;  %v5448_v55 = vsel %vm5374_vm5, %v4640_v60, 0.0 }
 0x4f6   :  { %v5435_v59 = vadd.f32 %v5434_v13, %v5433_v7  ;;  %v5951_v25 = vpop.f32.mrf.mxu1  ;;  %v5986_v1 = vpop.f32.mrf.mxu0  ;;  %v5580_v13 = vld [vmem:[%s7415_s5] ss:$0 sm:$0xff] }
 0x4f8   :  { %v4275_v46 = vpop.f32.mrf.mxu1  ;;  %v5437_v18 = vadd.f32 %v5436_v22, %v5435_v59  ;;  %v4786_v3 = vpop.f32.mrf.mxu0 }
 0x4f9   :  { %v5438_v58 = vsel %vm5374_vm5, %v4275_v46, 0.0  ;;  %v5452_v14 = vsel %vm5374_vm5, %v4786_v3, 0.0 }
 0x4fa   :  { %v5439_v5 = vadd.f32 %v5438_v58, %v5437_v18  ;;  %v5961_v62 = vpop.f32.mrf.mxu1  ;;  %v5996_v37 = vpop.f32.mrf.mxu0 }
 0x4fc   :  { %v4421_v40 = vpop.f32.mrf.mxu1  ;;  %v5441_v56 = vadd.f32 %v5440_v43, %v5439_v5  ;;  %v4932_v30 = vpop.f32.mrf.mxu0 }
 0x4fd   :  { %v5442_v26 = vsel %vm5374_vm5, %v4421_v40, 0.0  ;;  %v5456_v42 = vsel %vm5374_vm5, %v4932_v30, 0.0 }
 0x4fe   :  { %v5443_v6 = vadd.f32 %v5442_v26, %v5441_v56  ;;  %v5971_v9 = vpop.f32.mrf.mxu1  ;;  %v6006_v24 = vpop.f32.mrf.mxu0 }
 0x500   :  { %v4567_v57 = vpop.f32.mrf.mxu1  ;;  %v5445_v54 = vadd.f32 %v5444_v11, %v5443_v6  ;;  %v5078_v21 = vpop.f32.mrf.mxu0 }
 0x501   :  { %v5446_v27 = vsel %vm5374_vm5, %v4567_v57, 0.0  ;;  %v5460_v44 = vsel %vm5374_vm5, %v5078_v21, 0.0 }
 0x502   :  { %v5447_v15 = vadd.f32 %v5446_v27, %v5445_v54  ;;  %v5981_v31 = vpop.f32.mrf.mxu1  ;;  %v6016_v45 = vpop.f32.mrf.mxu0 }
 0x504   :  { %v4713_v4 = vpop.f32.mrf.mxu1  ;;  %v5449_v32 = vadd.f32 %v5448_v55, %v5447_v15  ;;  %v5224_v8 = vpop.f32.mrf.mxu0 }
 0x505   :  { %v5450_v33 = vsel %vm5374_vm5, %v4713_v4, 0.0  ;;  %v5464_v0 = vsel %vm5374_vm5, %v5224_v8, 0.0 }
 0x506   :  { %v5451_v35 = vadd.f32 %v5450_v33, %v5449_v32  ;;  %v5991_v39 = vpop.f32.mrf.mxu1  ;;  %v6026_v61 = vpop.f32.mrf.mxu0 }
 0x508   :  { %v4859_v28 = vpop.f32.mrf.mxu1  ;;  %v5453_v41 = vadd.f32 %v5452_v14, %v5451_v35  ;;  %v5370_v34 = vpop.f32.mrf.mxu0 }
 0x509   :  { %v5454_v50 = vsel %vm5374_vm5, %v4859_v28, 0.0  ;;  %v5468_v7 = vsel %vm5374_vm5, %v5370_v34, 0.0 }
 0x50a   :  { %v5455_v17 = vadd.f32 %v5454_v50, %v5453_v41  ;;  %v6001_v47 = vpop.f32.mrf.mxu1  ;;  %v6036_v20 = vpop.f32.mrf.mxu0 }
 0x50c   :  { %v5005_v48 = vpop.f32.mrf.mxu1  ;;  %v5457_v49 = vadd.f32 %v5456_v42, %v5455_v17 }
 0x50d   :  { %v5458_v16 = vsel %vm5374_vm5, %v5005_v48, 0.0 }
 0x50e   :  { %v5459_v63 = vadd.f32 %v5458_v16, %v5457_v49  ;;  %v6011_v51 = vpop.f32.mrf.mxu1 }
 0x510   :  { %v5151_v19 = vpop.f32.mrf.mxu1  ;;  %v5461_v12 = vadd.f32 %v5460_v44, %v5459_v63 }
 0x511   :  { %v5462_v52 = vsel %vm5374_vm5, %v5151_v19, 0.0 }
 0x512   :  { %v5463_v36 = vadd.f32 %v5462_v52, %v5461_v12  ;;  %v6021_v53 = vpop.f32.mrf.mxu1 }
 0x514   :  { %v5297_v38 = vpop.f32.mrf.mxu1  ;;  %v5465_v2 = vadd.f32 %v5464_v0, %v5463_v36 }
 0x515   :  { %v5466_v29 = vsel %vm5374_vm5, %v5297_v38, 0.0 }
 0x516   :  { %v5467_v10 = vadd.f32 %v5466_v29, %v5465_v2  ;;  %v6031_v23 = vpop.f32.mrf.mxu1 }
 0x518   :  { %v5469_v60 = vadd.f32 %v5468_v7, %v5467_v10 }
 0x51a   :  { %v5477_v59 = vadd.f32 %v5580_v13, %v5469_v60 }
 0x51c   :  { %5478 = vst.msk [vmem:[#allocation2] sm:$0x3] %vm5374_vm5, %v5477_v59 }
 0x51d   :  { %6056 = shalt.err (!%p6053_p4)
}
 0x51e   :  { %5488 = dma.vmem_to_hbm [thread:$0]  %s5486_s28, 32, %s7416_s6, [#allocation3]  }
 0x51f   :  { %6065 = dma.done.wait [#allocation3], 32  }
 0x520   :  { %6066 = vsyncadd [#allocation3], 4294967264 }
 0x521   :  { %5492 = vsyncpa [#allocation3], 1 }

</bundles_post_ra>
